<compile_context>
chip_gen: v5e
topology: v5e:2x2
jax: 0.10.0
libtpu: 0.0.40
codegen_flags: <defaults>
</compile_context>

<pallas_src>
import functools

import numpy as np
import jax
import jax.numpy as jnp
from jax import lax
from jax.experimental import pallas as pl
from jax.experimental.pallas import tpu as pltpu


def _round_up(n, m):
    return ((n + m - 1) // m) * m


def dycote_kernel(x_ref, w_i_ref, b_i_ref, w_h_ref, b_hn_ref,
                  weff_ref, beff_ref, y_ref, gx_scr, hh_scr, *, seq, tb_pad):
    """One batch-block of the forward pass.

    x_ref:    (seq*tb_pad, input_dim)   time-major rows: row = t*tb_pad + b_local (matmul dtype)
    w_i_ref:  (input_dim, 3*HP)         [W_ir | W_iz | W_in], each gate padded to HP=128k lanes
    b_i_ref:  (1, 3*HP)                 [b_r  | b_z  | b_in]  (b_r = b_ir+b_hr, b_z = b_iz+b_hz)
    w_h_ref:  (HP, 3*HP)                [W_hr | W_hz | W_hn], zero rows/cols in the padding
    b_hn_ref: (1, HP)
    weff_ref: (seq, HP)                 basis @ W_fc.T  (basis folded into the FC layer)
    beff_ref: (seq, 1)                  basis @ b_fc
    y_ref:    (seq, tb_pad)             output block (single lane-dense store)
    gx_scr:   (seq*tb_pad, 3*HP) VMEM   precomputed input-side gate terms (f32)
    hh_scr:   (seq, tb_pad, HP)  VMEM   hidden-state history (f32)
    """
    hid_pad = w_h_ref.shape[0]
    acc_t = jnp.float32

    # Hoisted out of the recurrence: weight load + bias broadcast (JAX does not CSE these).
    w_h = w_h_ref[...]                                                    # (HP, 3*HP)
    b_hn = jnp.broadcast_to(b_hn_ref[...], (tb_pad, hid_pad))             # (TBP, HP), f32

    # (1) Input-side projections (with input biases folded in) for ALL timesteps: one MXU matmul.
    gx_scr[...] = jnp.dot(x_ref[...], w_i_ref[...],
                          preferred_element_type=acc_t) + b_i_ref[...]

    # (2) Serial GRU recurrence: one fused hidden-side matmul per step; h carried in registers
    #     (f32); only the per-step history tile is written to VMEM.
    def step(t, h):
        row0 = pl.multiple_of(t * tb_pad, tb_pad)        # tb_pad is a multiple of 8 -> aligned
        g_x = gx_scr[pl.ds(row0, tb_pad), :]             # (TBP, 3*HP) full-tile load
        g_h = jnp.dot(h.astype(w_h.dtype), w_h, preferred_element_type=acc_t)
        # Gate slices are 128-lane aligned (hid_pad is a multiple of 128).
        r = jax.nn.sigmoid(g_x[:, :hid_pad] + g_h[:, :hid_pad])
        z = jax.nn.sigmoid(g_x[:, hid_pad:2 * hid_pad] + g_h[:, hid_pad:2 * hid_pad])
        n = jnp.tanh(g_x[:, 2 * hid_pad:] + r * (g_h[:, 2 * hid_pad:] + b_hn))
        h_new = (1.0 - z) * n + z * h
        hh_scr[t] = h_new                                 # full (TBP, HP) tile store, history only
        return h_new

    h0 = jnp.zeros((tb_pad, hid_pad), acc_t)
    unroll = True if seq <= 16 else 4                     # keep live vregs bounded at larger seq
    lax.fori_loop(0, seq, step, h0, unroll=unroll)

    # (3) Basis-folded FC, hoisted out of the loop: elementwise multiply + one lane reduce +
    #     ONE lane-dense output store.  (At large seq this would be chunked over t.)
    hh = hh_scr[...]                                      # (S, TBP, HP)
    w_eff = weff_ref[...][:, None, :]                     # (S, 1, HP) -> sublane broadcast
    y = jnp.sum(hh * w_eff, axis=-1) + beff_ref[...]      # (S, TBP) + (S, 1)
    y_ref[...] = y


def dycote_rnn_forward(x, params, basis_matrix, *, num_batch_blocks=None,
                       matmul_dtype=jnp.bfloat16, core_parallel=False):
    """x: (batch, seq, input_dim) f32, basis_matrix: (seq, B) f32 -> (batch, seq) f32."""
    x = jnp.asarray(x, jnp.float32)
    basis = jnp.asarray(basis_matrix, jnp.float32)
    batch, seq, input_dim = x.shape
    hidden = params["w_hr"].shape[0]

    hid_pad = _round_up(max(hidden, 128), 128)            # each gate gets its own 128-lane group
    g3p = 3 * hid_pad

    # Only split the batch across the grid when each block keeps at least one sublane group.
    if num_batch_blocks is None:
        num_batch_blocks = 2 if (batch % 2 == 0 and batch // 2 >= 8) else 1
    nb = num_batch_blocks
    assert batch % nb == 0, "batch must be divisible by num_batch_blocks"
    tb = batch // nb
    tb_pad = _round_up(max(tb, 8), 8)                     # sublane-aligned local batch
    rows = seq * tb_pad

    def pad_cols(a):                                      # (r, hidden) -> (r, hid_pad), zeros
        return jnp.pad(a, ((0, 0), (0, hid_pad - hidden)))

    # Fused, 128-lane-padded gate weights/biases (gate order r, z, n, as in torch.nn.GRU).
    w_i = jnp.concatenate([pad_cols(params["w_ir"]), pad_cols(params["w_iz"]),
                           pad_cols(params["w_in"])], axis=1)             # (D, 3*HP)
    b_i = jnp.concatenate([pad_cols(params["b_r"]), pad_cols(params["b_z"]),
                           pad_cols(params["b_in"])], axis=1)             # (1, 3*HP)
    w_h = jnp.concatenate([pad_cols(params["w_hr"]), pad_cols(params["w_hz"]),
                           pad_cols(params["w_hn"])], axis=1)             # (H, 3*HP)
    w_h = jnp.pad(w_h, ((0, hid_pad - hidden), (0, 0)))                   # (HP, 3*HP), zero rows
    b_hn = pad_cols(params["b_hn"])                                       # (1, HP)

    # Fold the basis into the FC layer (no basis replication, no (rows, B) intermediate).
    weff = pad_cols(basis @ params["w_fc"].T)                             # (seq, HP)
    beff = (basis @ params["b_fc"][0]).reshape(seq, 1)                    # (seq, 1)

    # Time-major, batch-blocked, batch-padded input: row t*tb_pad + b_local <-> (t, b_local).
    x_b = x.reshape(nb, tb, seq, input_dim)
    if tb_pad > tb:
        x_b = jnp.pad(x_b, ((0, 0), (0, tb_pad - tb), (0, 0), (0, 0)))
    x_blk = x_b.transpose(0, 2, 1, 3).reshape(nb, rows, input_dim)

    # MXU operands in bf16 (f32 accumulate); biases, state and nonlinearities stay f32.
    x_blk = x_blk.astype(matmul_dtype)
    w_i = w_i.astype(matmul_dtype)
    w_h = w_h.astype(matmul_dtype)

    kernel = functools.partial(dycote_kernel, seq=seq, tb_pad=tb_pad)

    # Plain "parallel" does not change codegen; CORE_PARALLEL (opt-in) shards the batch blocks
    # across v7x's two TensorCores when nb > 1 and per-core work is large enough.
    semantics = (pltpu.CORE_PARALLEL,) if core_parallel else ("arbitrary",)

    y_blk = pl.pallas_call(
        kernel,
        out_shape=jax.ShapeDtypeStruct((nb, seq, tb_pad), jnp.float32),
        grid=(nb,),
        in_specs=[
            pl.BlockSpec((None, rows, input_dim), lambda b: (b, 0, 0)),   # x block (per program)
            pl.BlockSpec((input_dim, g3p), lambda b: (0, 0)),             # W_i  (shared)
            pl.BlockSpec((1, g3p), lambda b: (0, 0)),                     # b_i
            pl.BlockSpec((hid_pad, g3p), lambda b: (0, 0)),               # W_h
            pl.BlockSpec((1, hid_pad), lambda b: (0, 0)),                 # b_hn
            pl.BlockSpec((seq, hid_pad), lambda b: (0, 0)),               # weff = basis @ W_fc.T
            pl.BlockSpec((seq, 1), lambda b: (0, 0)),                     # beff = basis @ b_fc
        ],
        out_specs=pl.BlockSpec((None, seq, tb_pad), lambda b: (b, 0, 0)),
        scratch_shapes=[
            pltpu.VMEM((rows, g3p), jnp.float32),          # precomputed input-side gate terms
            pltpu.VMEM((seq, tb_pad, hid_pad), jnp.float32),  # hidden-state history
        ],
        compiler_params=pltpu.CompilerParams(dimension_semantics=semantics),
    )(x_blk, w_i, b_i, w_h, b_hn, weff, beff)

    # (nb, seq, tb_pad) -> drop batch padding -> (batch, seq)
    return y_blk[:, :, :tb].transpose(0, 2, 1).reshape(batch, seq)


def reference_forward(x, params, basis_matrix):
    """Pure-JAX f32 reference (same math as torch.nn.GRU -> Linear -> basis reduce)."""
    batch, _, _ = x.shape
    hidden = params["w_hr"].shape[0]

    def cell(h, x_t):
        r = jax.nn.sigmoid(x_t @ params["w_ir"] + h @ params["w_hr"] + params["b_r"])
        z = jax.nn.sigmoid(x_t @ params["w_iz"] + h @ params["w_hz"] + params["b_z"])
        n = jnp.tanh(x_t @ params["w_in"] + params["b_in"]
                     + r * (h @ params["w_hn"] + params["b_hn"]))
        h_new = (1.0 - z) * n + z * h
        return h_new, h_new

    h0 = jnp.zeros((batch, hidden), jnp.float32)
    _, hs = lax.scan(cell, h0, jnp.transpose(x, (1, 0, 2)))     # (seq, batch, hidden)
    c = hs @ params["w_fc"] + params["b_fc"]                    # (seq, batch, B)
    y = jnp.sum(c * basis_matrix[:, None, :], axis=-1)          # (seq, batch)
    return jnp.transpose(y, (1, 0))                             # (batch, seq)


if __name__ == "__main__":
    # Small shapes consistent with the module: input_dim=4, hidden_dim=32, B=16.
    batch, seq, input_dim, hidden_dim, B = 2, 8, 4, 32, 16

    key = jax.random.PRNGKey(0)
    keys = jax.random.split(key, 16)
    bound = 1.0 / np.sqrt(hidden_dim)  # PyTorch-style uniform init

    def u(k_, shape):
        return jax.random.uniform(k_, shape, jnp.float32, -bound, bound)

    params = dict(
        w_ir=u(keys[0], (input_dim, hidden_dim)),
        w_iz=u(keys[1], (input_dim, hidden_dim)),
        w_in=u(keys[2], (input_dim, hidden_dim)),
        w_hr=u(keys[3], (hidden_dim, hidden_dim)),
        w_hz=u(keys[4], (hidden_dim, hidden_dim)),
        w_hn=u(keys[5], (hidden_dim, hidden_dim)),
        b_r=u(keys[6], (1, hidden_dim)),      # = b_ir + b_hr (folded)
        b_z=u(keys[7], (1, hidden_dim)),      # = b_iz + b_hz (folded)
        b_in=u(keys[8], (1, hidden_dim)),
        b_hn=u(keys[9], (1, hidden_dim)),
        w_fc=u(keys[10], (hidden_dim, B)),
        b_fc=u(keys[11], (1, B)),
    )
    x = jax.random.normal(keys[12], (batch, seq, input_dim), jnp.float32)
    basis_matrix = jax.random.normal(keys[13], (seq, B), jnp.float32)

    y_ref = reference_forward(x, params, basis_matrix)

    # Exact path: f32 MXU operands -> tight check against the f32 reference.
    y_f32 = jax.block_until_ready(
        dycote_rnn_forward(x, params, basis_matrix, matmul_dtype=jnp.float32))
    assert y_f32.shape == (batch, seq)
    np.testing.assert_allclose(np.asarray(y_f32), np.asarray(y_ref), rtol=1e-5, atol=1e-5)

    # Default path: bf16 MXU operands (f32 accumulate / state) -> looser tolerance
    # (bf16 rounding compounds over the seq recurrence).
    y_bf16 = jax.block_until_ready(dycote_rnn_forward(x, params, basis_matrix))
    assert y_bf16.shape == (batch, seq)
    np.testing.assert_allclose(np.asarray(y_bf16), np.asarray(y_ref), rtol=5e-2, atol=5e-2)

    print("KERNEL_OK")
</pallas_src>

<mosaic_0001>
module attributes {stable_mosaic.version = 11 : i64} {
  func.func @dycote_kernel(%arg0: i32, %arg1: memref<1x64x4xf32, #tpu.memory_space<vmem>>, %arg2: memref<4x384xf32, #tpu.memory_space<vmem>>, %arg3: memref<1x384xf32, #tpu.memory_space<vmem>>, %arg4: memref<128x384xf32, #tpu.memory_space<vmem>>, %arg5: memref<1x128xf32, #tpu.memory_space<vmem>>, %arg6: memref<8x128xf32, #tpu.memory_space<vmem>>, %arg7: memref<8x1xf32, #tpu.memory_space<vmem>>, %arg8: memref<1x8x8xf32, #tpu.memory_space<vmem>>, %arg9: memref<64x384xf32, #tpu.memory_space<vmem>>, %arg10: memref<8x8x128xf32, #tpu.memory_space<vmem>>) attributes {dimension_semantics = [#tpu.dimension_semantics<arbitrary>], iteration_bounds = array<i64: 1>, scalar_prefetch = 0 : i64, scratch_operands = 2 : i64, tpu.core_type = #tpu.core_type<tc>, window_params = [{transform_indices = @transform_0, window_bounds = array<i64: 1, 64, 4>}, {pipeline_mode = #tpu.pipeline_mode<synchronous>, transform_indices = @transform_1, window_bounds = array<i64: 4, 384>}, {pipeline_mode = #tpu.pipeline_mode<synchronous>, transform_indices = @transform_2, window_bounds = array<i64: 1, 384>}, {pipeline_mode = #tpu.pipeline_mode<synchronous>, transform_indices = @transform_3, window_bounds = array<i64: 128, 384>}, {pipeline_mode = #tpu.pipeline_mode<synchronous>, transform_indices = @transform_4, window_bounds = array<i64: 1, 128>}, {pipeline_mode = #tpu.pipeline_mode<synchronous>, transform_indices = @transform_5, window_bounds = array<i64: 8, 128>}, {pipeline_mode = #tpu.pipeline_mode<synchronous>, transform_indices = @transform_6, window_bounds = array<i64: 8, 1>}, {transform_indices = @transform_7, window_bounds = array<i64: 1, 8, 8>}]} {
    %c0 = arith.constant 0 : index
    %c0_0 = arith.constant 0 : index
    %0 = vector.load %arg4[%c0, %c0_0] : memref<128x384xf32, #tpu.memory_space<vmem>>, vector<128x384xf32>
    %c0_1 = arith.constant 0 : index
    %c0_2 = arith.constant 0 : index
    %1 = vector.load %arg5[%c0_1, %c0_2] : memref<1x128xf32, #tpu.memory_space<vmem>>, vector<1x128xf32>
    %2 = vector.shape_cast %1 : vector<1x128xf32> to vector<1x128xf32>
    %3 = vector.broadcast %2 : vector<1x128xf32> to vector<8x128xf32>
    %c0_3 = arith.constant 0 : index
    %c0_4 = arith.constant 0 : index
    %c0_5 = arith.constant 0 : index
    %4 = vector.load %arg1[%c0_3, %c0_4, %c0_5] : memref<1x64x4xf32, #tpu.memory_space<vmem>>, vector<1x64x4xf32>
    %5 = vector.shape_cast %4 : vector<1x64x4xf32> to vector<64x4xf32>
    %c0_6 = arith.constant 0 : index
    %c0_7 = arith.constant 0 : index
    %6 = vector.load %arg2[%c0_6, %c0_7] : memref<4x384xf32, #tpu.memory_space<vmem>>, vector<4x384xf32>
    %cst = arith.constant dense<0.000000e+00> : vector<64x384xf32>
    %7 = tpu.matmul %5, %6, %cst {dimension_numbers = #tpu.dot_dimension_numbers<[1], [0], [0], [1], [0, 0, 1, 1], [], []>} : vector<64x4xf32>, vector<4x384xf32>, vector<64x384xf32> -> vector<64x384xf32>
    %c0_8 = arith.constant 0 : index
    %c0_9 = arith.constant 0 : index
    %8 = vector.load %arg3[%c0_8, %c0_9] : memref<1x384xf32, #tpu.memory_space<vmem>>, vector<1x384xf32>
    %9 = vector.broadcast %8 : vector<1x384xf32> to vector<64x384xf32>
    %10 = arith.addf %7, %9 : vector<64x384xf32>
    %c0_10 = arith.constant 0 : index
    %c0_11 = arith.constant 0 : index
    %11 = vector.load %arg9[%c0_10, %c0_11] : memref<64x384xf32, #tpu.memory_space<vmem>>, vector<64x384xf32>
    tpu.vector_store %arg9[%c0_10, %c0_11], %10 {strides = array<i32>} : memref<64x384xf32, #tpu.memory_space<vmem>>, vector<64x384xf32>,
    %cst_12 = arith.constant 0.000000e+00 : f32
    %12 = vector.broadcast %cst_12 : f32 to vector<8x128xf32>
    %c0_i32 = arith.constant 0 : i32
    %c8_i32 = arith.constant 8 : i32
    %13 = arith.muli %c0_i32, %c8_i32 : i32
    %14 = tpu.assume_multiple %13, 8 : i32
    %15 = arith.index_cast %14 : i32 to index
    %c0_13 = arith.constant 0 : index
    %16 = vector.load %arg9[%15, %c0_13] : memref<64x384xf32, #tpu.memory_space<vmem>>, vector<8x384xf32>
    %cst_14 = arith.constant dense<0.000000e+00> : vector<8x384xf32>
    %17 = tpu.matmul %12, %0, %cst_14 {dimension_numbers = #tpu.dot_dimension_numbers<[1], [0], [0], [1], [0, 0, 1, 1], [], []>} : vector<8x128xf32>, vector<128x384xf32>, vector<8x384xf32> -> vector<8x384xf32>
    %18 = vector.extract_strided_slice %16 {offsets = [0, 0], sizes = [8, 128], strides = [1, 1]} : vector<8x384xf32> to vector<8x128xf32>
    %19 = vector.extract_strided_slice %17 {offsets = [0, 0], sizes = [8, 128], strides = [1, 1]} : vector<8x384xf32> to vector<8x128xf32>
    %20 = arith.addf %18, %19 : vector<8x128xf32>
    %21 = arith.negf %20 : vector<8x128xf32>
    %22 = math.exp %21 : vector<8x128xf32>
    %cst_15 = arith.constant 1.000000e+00 : f32
    %23 = vector.broadcast %cst_15 : f32 to vector<8x128xf32>
    %24 = arith.addf %23, %22 : vector<8x128xf32>
    %25 = arith.divf %23, %24 : vector<8x128xf32>
    %26 = vector.extract_strided_slice %16 {offsets = [0, 128], sizes = [8, 128], strides = [1, 1]} : vector<8x384xf32> to vector<8x128xf32>
    %27 = vector.extract_strided_slice %17 {offsets = [0, 128], sizes = [8, 128], strides = [1, 1]} : vector<8x384xf32> to vector<8x128xf32>
    %28 = arith.addf %26, %27 : vector<8x128xf32>
    %29 = arith.negf %28 : vector<8x128xf32>
    %30 = math.exp %29 : vector<8x128xf32>
    %cst_16 = arith.constant 1.000000e+00 : f32
    %31 = vector.broadcast %cst_16 : f32 to vector<8x128xf32>
    %32 = arith.addf %31, %30 : vector<8x128xf32>
    %33 = arith.divf %31, %32 : vector<8x128xf32>
    %34 = vector.extract_strided_slice %16 {offsets = [0, 256], sizes = [8, 128], strides = [1, 1]} : vector<8x384xf32> to vector<8x128xf32>
    %35 = vector.extract_strided_slice %17 {offsets = [0, 256], sizes = [8, 128], strides = [1, 1]} : vector<8x384xf32> to vector<8x128xf32>
    %36 = arith.addf %35, %3 : vector<8x128xf32>
    %37 = arith.mulf %25, %36 : vector<8x128xf32>
    %38 = arith.addf %34, %37 : vector<8x128xf32>
    %39 = math.tanh %38 : vector<8x128xf32>
    %cst_17 = arith.constant 1.000000e+00 : f32
    %40 = vector.broadcast %cst_17 : f32 to vector<8x128xf32>
    %41 = arith.subf %40, %33 : vector<8x128xf32>
    %42 = arith.mulf %41, %39 : vector<8x128xf32>
    %43 = arith.mulf %33, %12 : vector<8x128xf32>
    %44 = arith.addf %42, %43 : vector<8x128xf32>
    %45 = arith.index_cast %c0_i32 : i32 to index
    %c0_18 = arith.constant 0 : index
    %c0_19 = arith.constant 0 : index
    %46 = vector.load %arg10[%45, %c0_18, %c0_19] : memref<8x8x128xf32, #tpu.memory_space<vmem>>, vector<1x8x128xf32>
    %47 = vector.shape_cast %46 : vector<1x8x128xf32> to vector<8x128xf32>
    %48 = vector.shape_cast %44 : vector<8x128xf32> to vector<1x8x128xf32>
    tpu.vector_store %arg10[%45, %c0_18, %c0_19], %48 {strides = array<i32>} : memref<8x8x128xf32, #tpu.memory_space<vmem>>, vector<1x8x128xf32>,
    %c1_i32 = arith.constant 1 : i32
    %c8_i32_20 = arith.constant 8 : i32
    %49 = arith.muli %c1_i32, %c8_i32_20 : i32
    %50 = tpu.assume_multiple %49, 8 : i32
    %51 = arith.index_cast %50 : i32 to index
    %c0_21 = arith.constant 0 : index
    %52 = vector.load %arg9[%51, %c0_21] : memref<64x384xf32, #tpu.memory_space<vmem>>, vector<8x384xf32>
    %cst_22 = arith.constant dense<0.000000e+00> : vector<8x384xf32>
    %53 = tpu.matmul %44, %0, %cst_22 {dimension_numbers = #tpu.dot_dimension_numbers<[1], [0], [0], [1], [0, 0, 1, 1], [], []>} : vector<8x128xf32>, vector<128x384xf32>, vector<8x384xf32> -> vector<8x384xf32>
    %54 = vector.extract_strided_slice %52 {offsets = [0, 0], sizes = [8, 128], strides = [1, 1]} : vector<8x384xf32> to vector<8x128xf32>
    %55 = vector.extract_strided_slice %53 {offsets = [0, 0], sizes = [8, 128], strides = [1, 1]} : vector<8x384xf32> to vector<8x128xf32>
    %56 = arith.addf %54, %55 : vector<8x128xf32>
    %57 = arith.negf %56 : vector<8x128xf32>
    %58 = math.exp %57 : vector<8x128xf32>
    %cst_23 = arith.constant 1.000000e+00 : f32
    %59 = vector.broadcast %cst_23 : f32 to vector<8x128xf32>
    %60 = arith.addf %59, %58 : vector<8x128xf32>
    %61 = arith.divf %59, %60 : vector<8x128xf32>
    %62 = vector.extract_strided_slice %52 {offsets = [0, 128], sizes = [8, 128], strides = [1, 1]} : vector<8x384xf32> to vector<8x128xf32>
    %63 = vector.extract_strided_slice %53 {offsets = [0, 128], sizes = [8, 128], strides = [1, 1]} : vector<8x384xf32> to vector<8x128xf32>
    %64 = arith.addf %62, %63 : vector<8x128xf32>
    %65 = arith.negf %64 : vector<8x128xf32>
    %66 = math.exp %65 : vector<8x128xf32>
    %cst_24 = arith.constant 1.000000e+00 : f32
    %67 = vector.broadcast %cst_24 : f32 to vector<8x128xf32>
    %68 = arith.addf %67, %66 : vector<8x128xf32>
    %69 = arith.divf %67, %68 : vector<8x128xf32>
    %70 = vector.extract_strided_slice %52 {offsets = [0, 256], sizes = [8, 128], strides = [1, 1]} : vector<8x384xf32> to vector<8x128xf32>
    %71 = vector.extract_strided_slice %53 {offsets = [0, 256], sizes = [8, 128], strides = [1, 1]} : vector<8x384xf32> to vector<8x128xf32>
    %72 = arith.addf %71, %3 : vector<8x128xf32>
    %73 = arith.mulf %61, %72 : vector<8x128xf32>
    %74 = arith.addf %70, %73 : vector<8x128xf32>
    %75 = math.tanh %74 : vector<8x128xf32>
    %cst_25 = arith.constant 1.000000e+00 : f32
    %76 = vector.broadcast %cst_25 : f32 to vector<8x128xf32>
    %77 = arith.subf %76, %69 : vector<8x128xf32>
    %78 = arith.mulf %77, %75 : vector<8x128xf32>
    %79 = arith.mulf %69, %44 : vector<8x128xf32>
    %80 = arith.addf %78, %79 : vector<8x128xf32>
    %81 = arith.index_cast %c1_i32 : i32 to index
    %c0_26 = arith.constant 0 : index
    %c0_27 = arith.constant 0 : index
    %82 = vector.load %arg10[%81, %c0_26, %c0_27] : memref<8x8x128xf32, #tpu.memory_space<vmem>>, vector<1x8x128xf32>
    %83 = vector.shape_cast %82 : vector<1x8x128xf32> to vector<8x128xf32>
    %84 = vector.shape_cast %80 : vector<8x128xf32> to vector<1x8x128xf32>
    tpu.vector_store %arg10[%81, %c0_26, %c0_27], %84 {strides = array<i32>} : memref<8x8x128xf32, #tpu.memory_space<vmem>>, vector<1x8x128xf32>,
    %c2_i32 = arith.constant 2 : i32
    %c8_i32_28 = arith.constant 8 : i32
    %85 = arith.muli %c2_i32, %c8_i32_28 : i32
    %86 = tpu.assume_multiple %85, 8 : i32
    %87 = arith.index_cast %86 : i32 to index
    %c0_29 = arith.constant 0 : index
    %88 = vector.load %arg9[%87, %c0_29] : memref<64x384xf32, #tpu.memory_space<vmem>>, vector<8x384xf32>
    %cst_30 = arith.constant dense<0.000000e+00> : vector<8x384xf32>
    %89 = tpu.matmul %80, %0, %cst_30 {dimension_numbers = #tpu.dot_dimension_numbers<[1], [0], [0], [1], [0, 0, 1, 1], [], []>} : vector<8x128xf32>, vector<128x384xf32>, vector<8x384xf32> -> vector<8x384xf32>
    %90 = vector.extract_strided_slice %88 {offsets = [0, 0], sizes = [8, 128], strides = [1, 1]} : vector<8x384xf32> to vector<8x128xf32>
    %91 = vector.extract_strided_slice %89 {offsets = [0, 0], sizes = [8, 128], strides = [1, 1]} : vector<8x384xf32> to vector<8x128xf32>
    %92 = arith.addf %90, %91 : vector<8x128xf32>
    %93 = arith.negf %92 : vector<8x128xf32>
    %94 = math.exp %93 : vector<8x128xf32>
    %cst_31 = arith.constant 1.000000e+00 : f32
    %95 = vector.broadcast %cst_31 : f32 to vector<8x128xf32>
    %96 = arith.addf %95, %94 : vector<8x128xf32>
    %97 = arith.divf %95, %96 : vector<8x128xf32>
    %98 = vector.extract_strided_slice %88 {offsets = [0, 128], sizes = [8, 128], strides = [1, 1]} : vector<8x384xf32> to vector<8x128xf32>
    %99 = vector.extract_strided_slice %89 {offsets = [0, 128], sizes = [8, 128], strides = [1, 1]} : vector<8x384xf32> to vector<8x128xf32>
    %100 = arith.addf %98, %99 : vector<8x128xf32>
    %101 = arith.negf %100 : vector<8x128xf32>
    %102 = math.exp %101 : vector<8x128xf32>
    %cst_32 = arith.constant 1.000000e+00 : f32
    %103 = vector.broadcast %cst_32 : f32 to vector<8x128xf32>
    %104 = arith.addf %103, %102 : vector<8x128xf32>
    %105 = arith.divf %103, %104 : vector<8x128xf32>
    %106 = vector.extract_strided_slice %88 {offsets = [0, 256], sizes = [8, 128], strides = [1, 1]} : vector<8x384xf32> to vector<8x128xf32>
    %107 = vector.extract_strided_slice %89 {offsets = [0, 256], sizes = [8, 128], strides = [1, 1]} : vector<8x384xf32> to vector<8x128xf32>
    %108 = arith.addf %107, %3 : vector<8x128xf32>
    %109 = arith.mulf %97, %108 : vector<8x128xf32>
    %110 = arith.addf %106, %109 : vector<8x128xf32>
    %111 = math.tanh %110 : vector<8x128xf32>
    %cst_33 = arith.constant 1.000000e+00 : f32
    %112 = vector.broadcast %cst_33 : f32 to vector<8x128xf32>
    %113 = arith.subf %112, %105 : vector<8x128xf32>
    %114 = arith.mulf %113, %111 : vector<8x128xf32>
    %115 = arith.mulf %105, %80 : vector<8x128xf32>
    %116 = arith.addf %114, %115 : vector<8x128xf32>
    %117 = arith.index_cast %c2_i32 : i32 to index
    %c0_34 = arith.constant 0 : index
    %c0_35 = arith.constant 0 : index
    %118 = vector.load %arg10[%117, %c0_34, %c0_35] : memref<8x8x128xf32, #tpu.memory_space<vmem>>, vector<1x8x128xf32>
    %119 = vector.shape_cast %118 : vector<1x8x128xf32> to vector<8x128xf32>
    %120 = vector.shape_cast %116 : vector<8x128xf32> to vector<1x8x128xf32>
    tpu.vector_store %arg10[%117, %c0_34, %c0_35], %120 {strides = array<i32>} : memref<8x8x128xf32, #tpu.memory_space<vmem>>, vector<1x8x128xf32>,
    %c3_i32 = arith.constant 3 : i32
    %c8_i32_36 = arith.constant 8 : i32
    %121 = arith.muli %c3_i32, %c8_i32_36 : i32
    %122 = tpu.assume_multiple %121, 8 : i32
    %123 = arith.index_cast %122 : i32 to index
    %c0_37 = arith.constant 0 : index
    %124 = vector.load %arg9[%123, %c0_37] : memref<64x384xf32, #tpu.memory_space<vmem>>, vector<8x384xf32>
    %cst_38 = arith.constant dense<0.000000e+00> : vector<8x384xf32>
    %125 = tpu.matmul %116, %0, %cst_38 {dimension_numbers = #tpu.dot_dimension_numbers<[1], [0], [0], [1], [0, 0, 1, 1], [], []>} : vector<8x128xf32>, vector<128x384xf32>, vector<8x384xf32> -> vector<8x384xf32>
    %126 = vector.extract_strided_slice %124 {offsets = [0, 0], sizes = [8, 128], strides = [1, 1]} : vector<8x384xf32> to vector<8x128xf32>
    %127 = vector.extract_strided_slice %125 {offsets = [0, 0], sizes = [8, 128], strides = [1, 1]} : vector<8x384xf32> to vector<8x128xf32>
    %128 = arith.addf %126, %127 : vector<8x128xf32>
    %129 = arith.negf %128 : vector<8x128xf32>
    %130 = math.exp %129 : vector<8x128xf32>
    %cst_39 = arith.constant 1.000000e+00 : f32
    %131 = vector.broadcast %cst_39 : f32 to vector<8x128xf32>
    %132 = arith.addf %131, %130 : vector<8x128xf32>
    %133 = arith.divf %131, %132 : vector<8x128xf32>
    %134 = vector.extract_strided_slice %124 {offsets = [0, 128], sizes = [8, 128], strides = [1, 1]} : vector<8x384xf32> to vector<8x128xf32>
    %135 = vector.extract_strided_slice %125 {offsets = [0, 128], sizes = [8, 128], strides = [1, 1]} : vector<8x384xf32> to vector<8x128xf32>
    %136 = arith.addf %134, %135 : vector<8x128xf32>
    %137 = arith.negf %136 : vector<8x128xf32>
    %138 = math.exp %137 : vector<8x128xf32>
    %cst_40 = arith.constant 1.000000e+00 : f32
    %139 = vector.broadcast %cst_40 : f32 to vector<8x128xf32>
    %140 = arith.addf %139, %138 : vector<8x128xf32>
    %141 = arith.divf %139, %140 : vector<8x128xf32>
    %142 = vector.extract_strided_slice %124 {offsets = [0, 256], sizes = [8, 128], strides = [1, 1]} : vector<8x384xf32> to vector<8x128xf32>
    %143 = vector.extract_strided_slice %125 {offsets = [0, 256], sizes = [8, 128], strides = [1, 1]} : vector<8x384xf32> to vector<8x128xf32>
    %144 = arith.addf %143, %3 : vector<8x128xf32>
    %145 = arith.mulf %133, %144 : vector<8x128xf32>
    %146 = arith.addf %142, %145 : vector<8x128xf32>
    %147 = math.tanh %146 : vector<8x128xf32>
    %cst_41 = arith.constant 1.000000e+00 : f32
    %148 = vector.broadcast %cst_41 : f32 to vector<8x128xf32>
    %149 = arith.subf %148, %141 : vector<8x128xf32>
    %150 = arith.mulf %149, %147 : vector<8x128xf32>
    %151 = arith.mulf %141, %116 : vector<8x128xf32>
    %152 = arith.addf %150, %151 : vector<8x128xf32>
    %153 = arith.index_cast %c3_i32 : i32 to index
    %c0_42 = arith.constant 0 : index
    %c0_43 = arith.constant 0 : index
    %154 = vector.load %arg10[%153, %c0_42, %c0_43] : memref<8x8x128xf32, #tpu.memory_space<vmem>>, vector<1x8x128xf32>
    %155 = vector.shape_cast %154 : vector<1x8x128xf32> to vector<8x128xf32>
    %156 = vector.shape_cast %152 : vector<8x128xf32> to vector<1x8x128xf32>
    tpu.vector_store %arg10[%153, %c0_42, %c0_43], %156 {strides = array<i32>} : memref<8x8x128xf32, #tpu.memory_space<vmem>>, vector<1x8x128xf32>,
    %c4_i32 = arith.constant 4 : i32
    %c8_i32_44 = arith.constant 8 : i32
    %157 = arith.muli %c4_i32, %c8_i32_44 : i32
    %158 = tpu.assume_multiple %157, 8 : i32
    %159 = arith.index_cast %158 : i32 to index
    %c0_45 = arith.constant 0 : index
    %160 = vector.load %arg9[%159, %c0_45] : memref<64x384xf32, #tpu.memory_space<vmem>>, vector<8x384xf32>
    %cst_46 = arith.constant dense<0.000000e+00> : vector<8x384xf32>
    %161 = tpu.matmul %152, %0, %cst_46 {dimension_numbers = #tpu.dot_dimension_numbers<[1], [0], [0], [1], [0, 0, 1, 1], [], []>} : vector<8x128xf32>, vector<128x384xf32>, vector<8x384xf32> -> vector<8x384xf32>
    %162 = vector.extract_strided_slice %160 {offsets = [0, 0], sizes = [8, 128], strides = [1, 1]} : vector<8x384xf32> to vector<8x128xf32>
    %163 = vector.extract_strided_slice %161 {offsets = [0, 0], sizes = [8, 128], strides = [1, 1]} : vector<8x384xf32> to vector<8x128xf32>
    %164 = arith.addf %162, %163 : vector<8x128xf32>
    %165 = arith.negf %164 : vector<8x128xf32>
    %166 = math.exp %165 : vector<8x128xf32>
    %cst_47 = arith.constant 1.000000e+00 : f32
    %167 = vector.broadcast %cst_47 : f32 to vector<8x128xf32>
    %168 = arith.addf %167, %166 : vector<8x128xf32>
    %169 = arith.divf %167, %168 : vector<8x128xf32>
    %170 = vector.extract_strided_slice %160 {offsets = [0, 128], sizes = [8, 128], strides = [1, 1]} : vector<8x384xf32> to vector<8x128xf32>
    %171 = vector.extract_strided_slice %161 {offsets = [0, 128], sizes = [8, 128], strides = [1, 1]} : vector<8x384xf32> to vector<8x128xf32>
    %172 = arith.addf %170, %171 : vector<8x128xf32>
    %173 = arith.negf %172 : vector<8x128xf32>
    %174 = math.exp %173 : vector<8x128xf32>
    %cst_48 = arith.constant 1.000000e+00 : f32
    %175 = vector.broadcast %cst_48 : f32 to vector<8x128xf32>
    %176 = arith.addf %175, %174 : vector<8x128xf32>
    %177 = arith.divf %175, %176 : vector<8x128xf32>
    %178 = vector.extract_strided_slice %160 {offsets = [0, 256], sizes = [8, 128], strides = [1, 1]} : vector<8x384xf32> to vector<8x128xf32>
    %179 = vector.extract_strided_slice %161 {offsets = [0, 256], sizes = [8, 128], strides = [1, 1]} : vector<8x384xf32> to vector<8x128xf32>
    %180 = arith.addf %179, %3 : vector<8x128xf32>
    %181 = arith.mulf %169, %180 : vector<8x128xf32>
    %182 = arith.addf %178, %181 : vector<8x128xf32>
    %183 = math.tanh %182 : vector<8x128xf32>
    %cst_49 = arith.constant 1.000000e+00 : f32
    %184 = vector.broadcast %cst_49 : f32 to vector<8x128xf32>
    %185 = arith.subf %184, %177 : vector<8x128xf32>
    %186 = arith.mulf %185, %183 : vector<8x128xf32>
    %187 = arith.mulf %177, %152 : vector<8x128xf32>
    %188 = arith.addf %186, %187 : vector<8x128xf32>
    %189 = arith.index_cast %c4_i32 : i32 to index
    %c0_50 = arith.constant 0 : index
    %c0_51 = arith.constant 0 : index
    %190 = vector.load %arg10[%189, %c0_50, %c0_51] : memref<8x8x128xf32, #tpu.memory_space<vmem>>, vector<1x8x128xf32>
    %191 = vector.shape_cast %190 : vector<1x8x128xf32> to vector<8x128xf32>
    %192 = vector.shape_cast %188 : vector<8x128xf32> to vector<1x8x128xf32>
    tpu.vector_store %arg10[%189, %c0_50, %c0_51], %192 {strides = array<i32>} : memref<8x8x128xf32, #tpu.memory_space<vmem>>, vector<1x8x128xf32>,
    %c5_i32 = arith.constant 5 : i32
    %c8_i32_52 = arith.constant 8 : i32
    %193 = arith.muli %c5_i32, %c8_i32_52 : i32
    %194 = tpu.assume_multiple %193, 8 : i32
    %195 = arith.index_cast %194 : i32 to index
    %c0_53 = arith.constant 0 : index
    %196 = vector.load %arg9[%195, %c0_53] : memref<64x384xf32, #tpu.memory_space<vmem>>, vector<8x384xf32>
    %cst_54 = arith.constant dense<0.000000e+00> : vector<8x384xf32>
    %197 = tpu.matmul %188, %0, %cst_54 {dimension_numbers = #tpu.dot_dimension_numbers<[1], [0], [0], [1], [0, 0, 1, 1], [], []>} : vector<8x128xf32>, vector<128x384xf32>, vector<8x384xf32> -> vector<8x384xf32>
    %198 = vector.extract_strided_slice %196 {offsets = [0, 0], sizes = [8, 128], strides = [1, 1]} : vector<8x384xf32> to vector<8x128xf32>
    %199 = vector.extract_strided_slice %197 {offsets = [0, 0], sizes = [8, 128], strides = [1, 1]} : vector<8x384xf32> to vector<8x128xf32>
    %200 = arith.addf %198, %199 : vector<8x128xf32>
    %201 = arith.negf %200 : vector<8x128xf32>
    %202 = math.exp %201 : vector<8x128xf32>
    %cst_55 = arith.constant 1.000000e+00 : f32
    %203 = vector.broadcast %cst_55 : f32 to vector<8x128xf32>
    %204 = arith.addf %203, %202 : vector<8x128xf32>
    %205 = arith.divf %203, %204 : vector<8x128xf32>
    %206 = vector.extract_strided_slice %196 {offsets = [0, 128], sizes = [8, 128], strides = [1, 1]} : vector<8x384xf32> to vector<8x128xf32>
    %207 = vector.extract_strided_slice %197 {offsets = [0, 128], sizes = [8, 128], strides = [1, 1]} : vector<8x384xf32> to vector<8x128xf32>
    %208 = arith.addf %206, %207 : vector<8x128xf32>
    %209 = arith.negf %208 : vector<8x128xf32>
    %210 = math.exp %209 : vector<8x128xf32>
    %cst_56 = arith.constant 1.000000e+00 : f32
    %211 = vector.broadcast %cst_56 : f32 to vector<8x128xf32>
    %212 = arith.addf %211, %210 : vector<8x128xf32>
    %213 = arith.divf %211, %212 : vector<8x128xf32>
    %214 = vector.extract_strided_slice %196 {offsets = [0, 256], sizes = [8, 128], strides = [1, 1]} : vector<8x384xf32> to vector<8x128xf32>
    %215 = vector.extract_strided_slice %197 {offsets = [0, 256], sizes = [8, 128], strides = [1, 1]} : vector<8x384xf32> to vector<8x128xf32>
    %216 = arith.addf %215, %3 : vector<8x128xf32>
    %217 = arith.mulf %205, %216 : vector<8x128xf32>
    %218 = arith.addf %214, %217 : vector<8x128xf32>
    %219 = math.tanh %218 : vector<8x128xf32>
    %cst_57 = arith.constant 1.000000e+00 : f32
    %220 = vector.broadcast %cst_57 : f32 to vector<8x128xf32>
    %221 = arith.subf %220, %213 : vector<8x128xf32>
    %222 = arith.mulf %221, %219 : vector<8x128xf32>
    %223 = arith.mulf %213, %188 : vector<8x128xf32>
    %224 = arith.addf %222, %223 : vector<8x128xf32>
    %225 = arith.index_cast %c5_i32 : i32 to index
    %c0_58 = arith.constant 0 : index
    %c0_59 = arith.constant 0 : index
    %226 = vector.load %arg10[%225, %c0_58, %c0_59] : memref<8x8x128xf32, #tpu.memory_space<vmem>>, vector<1x8x128xf32>
    %227 = vector.shape_cast %226 : vector<1x8x128xf32> to vector<8x128xf32>
    %228 = vector.shape_cast %224 : vector<8x128xf32> to vector<1x8x128xf32>
    tpu.vector_store %arg10[%225, %c0_58, %c0_59], %228 {strides = array<i32>} : memref<8x8x128xf32, #tpu.memory_space<vmem>>, vector<1x8x128xf32>,
    %c6_i32 = arith.constant 6 : i32
    %c8_i32_60 = arith.constant 8 : i32
    %229 = arith.muli %c6_i32, %c8_i32_60 : i32
    %230 = tpu.assume_multiple %229, 8 : i32
    %231 = arith.index_cast %230 : i32 to index
    %c0_61 = arith.constant 0 : index
    %232 = vector.load %arg9[%231, %c0_61] : memref<64x384xf32, #tpu.memory_space<vmem>>, vector<8x384xf32>
    %cst_62 = arith.constant dense<0.000000e+00> : vector<8x384xf32>
    %233 = tpu.matmul %224, %0, %cst_62 {dimension_numbers = #tpu.dot_dimension_numbers<[1], [0], [0], [1], [0, 0, 1, 1], [], []>} : vector<8x128xf32>, vector<128x384xf32>, vector<8x384xf32> -> vector<8x384xf32>
    %234 = vector.extract_strided_slice %232 {offsets = [0, 0], sizes = [8, 128], strides = [1, 1]} : vector<8x384xf32> to vector<8x128xf32>
    %235 = vector.extract_strided_slice %233 {offsets = [0, 0], sizes = [8, 128], strides = [1, 1]} : vector<8x384xf32> to vector<8x128xf32>
    %236 = arith.addf %234, %235 : vector<8x128xf32>
    %237 = arith.negf %236 : vector<8x128xf32>
    %238 = math.exp %237 : vector<8x128xf32>
    %cst_63 = arith.constant 1.000000e+00 : f32
    %239 = vector.broadcast %cst_63 : f32 to vector<8x128xf32>
    %240 = arith.addf %239, %238 : vector<8x128xf32>
    %241 = arith.divf %239, %240 : vector<8x128xf32>
    %242 = vector.extract_strided_slice %232 {offsets = [0, 128], sizes = [8, 128], strides = [1, 1]} : vector<8x384xf32> to vector<8x128xf32>
    %243 = vector.extract_strided_slice %233 {offsets = [0, 128], sizes = [8, 128], strides = [1, 1]} : vector<8x384xf32> to vector<8x128xf32>
    %244 = arith.addf %242, %243 : vector<8x128xf32>
    %245 = arith.negf %244 : vector<8x128xf32>
    %246 = math.exp %245 : vector<8x128xf32>
    %cst_64 = arith.constant 1.000000e+00 : f32
    %247 = vector.broadcast %cst_64 : f32 to vector<8x128xf32>
    %248 = arith.addf %247, %246 : vector<8x128xf32>
    %249 = arith.divf %247, %248 : vector<8x128xf32>
    %250 = vector.extract_strided_slice %232 {offsets = [0, 256], sizes = [8, 128], strides = [1, 1]} : vector<8x384xf32> to vector<8x128xf32>
    %251 = vector.extract_strided_slice %233 {offsets = [0, 256], sizes = [8, 128], strides = [1, 1]} : vector<8x384xf32> to vector<8x128xf32>
    %252 = arith.addf %251, %3 : vector<8x128xf32>
    %253 = arith.mulf %241, %252 : vector<8x128xf32>
    %254 = arith.addf %250, %253 : vector<8x128xf32>
    %255 = math.tanh %254 : vector<8x128xf32>
    %cst_65 = arith.constant 1.000000e+00 : f32
    %256 = vector.broadcast %cst_65 : f32 to vector<8x128xf32>
    %257 = arith.subf %256, %249 : vector<8x128xf32>
    %258 = arith.mulf %257, %255 : vector<8x128xf32>
    %259 = arith.mulf %249, %224 : vector<8x128xf32>
    %260 = arith.addf %258, %259 : vector<8x128xf32>
    %261 = arith.index_cast %c6_i32 : i32 to index
    %c0_66 = arith.constant 0 : index
    %c0_67 = arith.constant 0 : index
    %262 = vector.load %arg10[%261, %c0_66, %c0_67] : memref<8x8x128xf32, #tpu.memory_space<vmem>>, vector<1x8x128xf32>
    %263 = vector.shape_cast %262 : vector<1x8x128xf32> to vector<8x128xf32>
    %264 = vector.shape_cast %260 : vector<8x128xf32> to vector<1x8x128xf32>
    tpu.vector_store %arg10[%261, %c0_66, %c0_67], %264 {strides = array<i32>} : memref<8x8x128xf32, #tpu.memory_space<vmem>>, vector<1x8x128xf32>,
    %c7_i32 = arith.constant 7 : i32
    %c8_i32_68 = arith.constant 8 : i32
    %265 = arith.muli %c7_i32, %c8_i32_68 : i32
    %266 = tpu.assume_multiple %265, 8 : i32
    %267 = arith.index_cast %266 : i32 to index
    %c0_69 = arith.constant 0 : index
    %268 = vector.load %arg9[%267, %c0_69] : memref<64x384xf32, #tpu.memory_space<vmem>>, vector<8x384xf32>
    %cst_70 = arith.constant dense<0.000000e+00> : vector<8x384xf32>
    %269 = tpu.matmul %260, %0, %cst_70 {dimension_numbers = #tpu.dot_dimension_numbers<[1], [0], [0], [1], [0, 0, 1, 1], [], []>} : vector<8x128xf32>, vector<128x384xf32>, vector<8x384xf32> -> vector<8x384xf32>
    %270 = vector.extract_strided_slice %268 {offsets = [0, 0], sizes = [8, 128], strides = [1, 1]} : vector<8x384xf32> to vector<8x128xf32>
    %271 = vector.extract_strided_slice %269 {offsets = [0, 0], sizes = [8, 128], strides = [1, 1]} : vector<8x384xf32> to vector<8x128xf32>
    %272 = arith.addf %270, %271 : vector<8x128xf32>
    %273 = arith.negf %272 : vector<8x128xf32>
    %274 = math.exp %273 : vector<8x128xf32>
    %cst_71 = arith.constant 1.000000e+00 : f32
    %275 = vector.broadcast %cst_71 : f32 to vector<8x128xf32>
    %276 = arith.addf %275, %274 : vector<8x128xf32>
    %277 = arith.divf %275, %276 : vector<8x128xf32>
    %278 = vector.extract_strided_slice %268 {offsets = [0, 128], sizes = [8, 128], strides = [1, 1]} : vector<8x384xf32> to vector<8x128xf32>
    %279 = vector.extract_strided_slice %269 {offsets = [0, 128], sizes = [8, 128], strides = [1, 1]} : vector<8x384xf32> to vector<8x128xf32>
    %280 = arith.addf %278, %279 : vector<8x128xf32>
    %281 = arith.negf %280 : vector<8x128xf32>
    %282 = math.exp %281 : vector<8x128xf32>
    %cst_72 = arith.constant 1.000000e+00 : f32
    %283 = vector.broadcast %cst_72 : f32 to vector<8x128xf32>
    %284 = arith.addf %283, %282 : vector<8x128xf32>
    %285 = arith.divf %283, %284 : vector<8x128xf32>
    %286 = vector.extract_strided_slice %268 {offsets = [0, 256], sizes = [8, 128], strides = [1, 1]} : vector<8x384xf32> to vector<8x128xf32>
    %287 = vector.extract_strided_slice %269 {offsets = [0, 256], sizes = [8, 128], strides = [1, 1]} : vector<8x384xf32> to vector<8x128xf32>
    %288 = arith.addf %287, %3 : vector<8x128xf32>
    %289 = arith.mulf %277, %288 : vector<8x128xf32>
    %290 = arith.addf %286, %289 : vector<8x128xf32>
    %291 = math.tanh %290 : vector<8x128xf32>
    %cst_73 = arith.constant 1.000000e+00 : f32
    %292 = vector.broadcast %cst_73 : f32 to vector<8x128xf32>
    %293 = arith.subf %292, %285 : vector<8x128xf32>
    %294 = arith.mulf %293, %291 : vector<8x128xf32>
    %295 = arith.mulf %285, %260 : vector<8x128xf32>
    %296 = arith.addf %294, %295 : vector<8x128xf32>
    %297 = arith.index_cast %c7_i32 : i32 to index
    %c0_74 = arith.constant 0 : index
    %c0_75 = arith.constant 0 : index
    %298 = vector.load %arg10[%297, %c0_74, %c0_75] : memref<8x8x128xf32, #tpu.memory_space<vmem>>, vector<1x8x128xf32>
    %299 = vector.shape_cast %298 : vector<1x8x128xf32> to vector<8x128xf32>
    %300 = vector.shape_cast %296 : vector<8x128xf32> to vector<1x8x128xf32>
    tpu.vector_store %arg10[%297, %c0_74, %c0_75], %300 {strides = array<i32>} : memref<8x8x128xf32, #tpu.memory_space<vmem>>, vector<1x8x128xf32>,
    %c8_i32_76 = arith.constant 8 : i32
    %c0_77 = arith.constant 0 : index
    %c0_78 = arith.constant 0 : index
    %c0_79 = arith.constant 0 : index
    %301 = vector.load %arg10[%c0_77, %c0_78, %c0_79] : memref<8x8x128xf32, #tpu.memory_space<vmem>>, vector<8x8x128xf32>
    %c0_80 = arith.constant 0 : index
    %c0_81 = arith.constant 0 : index
    %302 = vector.load %arg6[%c0_80, %c0_81] : memref<8x128xf32, #tpu.memory_space<vmem>>, vector<8x128xf32>
    %303 = vector.shape_cast %302 : vector<8x128xf32> to vector<8x1x128xf32>
    %304 = vector.broadcast %303 : vector<8x1x128xf32> to vector<8x8x128xf32>
    %305 = arith.mulf %301, %304 : vector<8x8x128xf32>
    %cst_82 = arith.constant dense<0.000000e+00> : vector<8x8xf32>
    %306 = vector.multi_reduction <add>, %305, %cst_82 [2] : vector<8x8x128xf32> to vector<8x8xf32>
    %c0_83 = arith.constant 0 : index
    %c0_84 = arith.constant 0 : index
    %307 = vector.load %arg7[%c0_83, %c0_84] : memref<8x1xf32, #tpu.memory_space<vmem>>, vector<8x1xf32>
    %308 = vector.broadcast %307 : vector<8x1xf32> to vector<8x8xf32>
    %309 = arith.addf %306, %308 : vector<8x8xf32>
    %c0_85 = arith.constant 0 : index
    %c0_86 = arith.constant 0 : index
    %c0_87 = arith.constant 0 : index
    %310 = vector.load %arg8[%c0_85, %c0_86, %c0_87] : memref<1x8x8xf32, #tpu.memory_space<vmem>>, vector<1x8x8xf32>
    %311 = vector.shape_cast %310 : vector<1x8x8xf32> to vector<8x8xf32>
    %312 = vector.shape_cast %309 : vector<8x8xf32> to vector<1x8x8xf32>
    tpu.vector_store %arg8[%c0_85, %c0_86, %c0_87], %312 {strides = array<i32>} : memref<1x8x8xf32, #tpu.memory_space<vmem>>, vector<1x8x8xf32>,
    return
  }
  func.func @transform_0(%arg0: i32) -> (i32, i32, i32) {
    %c0_i32 = arith.constant 0 : i32
    %c0_i32_0 = arith.constant 0 : i32
    %c0_i32_1 = arith.constant 0 : i32
    return %arg0, %c0_i32, %c0_i32_0 : i32, i32, i32
  }
  func.func @transform_1(%arg0: i32) -> (i32, i32) {
    %c0_i32 = arith.constant 0 : i32
    %c0_i32_0 = arith.constant 0 : i32
    %c0_i32_1 = arith.constant 0 : i32
    return %c0_i32, %c0_i32_0 : i32, i32
  }
  func.func @transform_2(%arg0: i32) -> (i32, i32) {
    %c0_i32 = arith.constant 0 : i32
    %c0_i32_0 = arith.constant 0 : i32
    %c0_i32_1 = arith.constant 0 : i32
    return %c0_i32, %c0_i32_0 : i32, i32
  }
  func.func @transform_3(%arg0: i32) -> (i32, i32) {
    %c0_i32 = arith.constant 0 : i32
    %c0_i32_0 = arith.constant 0 : i32
    %c0_i32_1 = arith.constant 0 : i32
    return %c0_i32, %c0_i32_0 : i32, i32
  }
  func.func @transform_4(%arg0: i32) -> (i32, i32) {
    %c0_i32 = arith.constant 0 : i32
    %c0_i32_0 = arith.constant 0 : i32
    %c0_i32_1 = arith.constant 0 : i32
    return %c0_i32, %c0_i32_0 : i32, i32
  }
  func.func @transform_5(%arg0: i32) -> (i32, i32) {
    %c0_i32 = arith.constant 0 : i32
    %c0_i32_0 = arith.constant 0 : i32
    %c0_i32_1 = arith.constant 0 : i32
    return %c0_i32, %c0_i32_0 : i32, i32
  }
  func.func @transform_6(%arg0: i32) -> (i32, i32) {
    %c0_i32 = arith.constant 0 : i32
    %c0_i32_0 = arith.constant 0 : i32
    %c0_i32_1 = arith.constant 0 : i32
    return %c0_i32, %c0_i32_0 : i32, i32
  }
  func.func @transform_7(%arg0: i32) -> (i32, i32, i32) {
    %c0_i32 = arith.constant 0 : i32
    %c0_i32_0 = arith.constant 0 : i32
    %c0_i32_1 = arith.constant 0 : i32
    return %arg0, %c0_i32, %c0_i32_0 : i32, i32, i32
  }
}

</mosaic_0001>

<bundles_post_ra>
// kernel: tpu_custom_call.1
= control target key start
LH: loop header
LB: loop body
LE: loop exit
PB: predicated region body
PF: predicated region fallthrough
CT: control target
= control target key end

     0   :  { %12 = vsyncpa [#allocation5], 0  ;;  %s2513_s0 = inlined_call_operand.vmem [shape: f32[1,64,4], index: 0, kind: input, shape index: {}]   ;;  %s2514_s1 = inlined_call_operand.vmem [shape: f32[4,384], index: 1, kind: input, shape index: {}]   ;;  %s2515_s2 = inlined_call_operand.vmem [shape: f32[1,384], index: 2, kind: input, shape index: {}]   ;;  %s2516_s3 = inlined_call_operand.hbm [shape: f32[128,384], index: 3, kind: input, shape index: {}]   ;;  %s2517_s4 = inlined_call_operand.vmem [shape: f32[1,128], index: 4, kind: input, shape index: {}]   ;;  %s2518_s5 = inlined_call_operand.vmem [shape: f32[8,128], index: 5, kind: input, shape index: {}]   ;;  %s2519_s6 = inlined_call_operand.vmem [shape: f32[8,1], index: 6, kind: input, shape index: {}]   ;;  %s2520_s7 = inlined_call_operand.hbm [shape: f32[1,8,8], index: 7, kind: output, shape index: {}]  }
   0x1   :  { %13 = vsyncpa [#allocation6], 0  ;;  %s24_s26 = sshll.u32 %s2516_s3, 4  ;;  %s1633_s27 = smov [#allocation4]   ;;  %s25_s26 = int_to_ptr.hbm [resolvable:$true] %s24_s26 }
   0x2   :  { %s26_s28 = sshll.u32 %s1633_s27, 4  ;;  %s1634_s29 = smov 384   ;;  %s27_s28 = int_to_ptr.vmem [resolvable:$true] %s26_s28 }
   0x3   :  { %s1635_s30 = smov 24  }
   0x4   :  { %32 = dma.hbm_to_vmem [thread:$0]  %s25_s26, 6144, %s27_s28, [#allocation5], %s1634_s29, %s1634_s29, %s1635_s30  }
   0x5   :  { %1629 = dma.done.wait [#allocation5], 6144  }
   0x6   :  { %1630 = vsyncadd [#allocation5], 4294961152  ;;  %v1682_v0 = vld [vmem:[#allocation4 + $0x168] sm:$0xff]  ;;  %v1684_v1 = vld [vmem:[#allocation4 + $0x150] sm:$0xff]  ;;  %vm146_vm0 = vcmask 1043456   ;;  %vm121_vm1 = vcmask 31744  }
   0x7   :  { %306 = vmatpush.msra.mxu3 %v1682_v0  ;;  %v103_v2 = vld [vmem:[%s2514_s1] sm:$0xff]  ;;  %v1693_v4 = vld [vmem:[#allocation4 + $0x120] sm:$0xff]  ;;  %v1696_v5 = vld [vmem:[#allocation4 + $0x108] sm:$0xff]  ;;  %v1636_v38 = vmov 0.0   ;;  %s1379_s13 = sshll.u32 %s2520_s7, 4  ;;  %s1380_s13 = int_to_ptr.hbm [resolvable:$true] %s1379_s13 }
   0x8   :  { %v1690_v3 = vld [vmem:[#allocation4 + $0x138] sm:$0xff]  ;;  %115 = vst [vmem:[#allocation1] ss:$2 sm:$0xff] %v103_v2  ;;  %v1704_v7 = vld [vmem:[#allocation4 + $0xf0] sm:$0xff]  ;;  %v1716_v11 = vld [vmem:[#allocation4 + $0x160] sm:$0xff] }
   0x9   :  { %307 = vmatpush.msra.mxu3 %v1684_v1  ;;  %v1702_v6 = vld [vmem:[%s2513_s0] sm:$0xff]  ;;  %v1718_v12 = vld [vmem:[#allocation4 + $0xc0] sm:$0xff]  ;;  %v1722_v13 = vld [vmem:[#allocation4 + $0x148] sm:$0xff] }
   0xa   :  { %v1707_v9 = vld [vmem:[#allocation4 + $0x178] sm:$0xff]  ;;  %v1727_v14 = vld [vmem:[%s2513_s0 + $0x38] sm:$0xff]  ;;  %v1729_v15 = vld [vmem:[#allocation4 + $0xa8] sm:$0xff] }
   0xb   :  { %308 = vmatpush.msra.mxu3 %v1690_v3  ;;  %v1710_v10 = vld [vmem:[#allocation4 + $0xd8] sm:$0xff]  ;;  %v1735_v16 = vld [vmem:[#allocation4 + $0x130] sm:$0xff]  ;;  %v1740_v17 = vld [vmem:[%s2513_s0 + $0x8] sm:$0xff] }
   0xc   :  { %v1742_v18 = vld [vmem:[#allocation4 + $0x90] sm:$0xff]  ;;  %v1746_v19 = vld [vmem:[#allocation4 + $0x118] sm:$0xff]  ;;  %v1754_v21 = vld [vmem:[#allocation4 + $0x100] sm:$0xff] }
   0xd   :  { %309 = vmatpush.msra.mxu3 %v1693_v4  ;;  %v1748_v20 = vld [vmem:[#allocation4 + $0x78] sm:$0xff]  ;;  %v1756_v22 = vld [vmem:[#allocation4 + $0x60] sm:$0xff]  ;;  %v1760_v23 = vld [vmem:[#allocation4 + $0xe8] sm:$0xff] }
   0xe   :  { %v1762_v25 = vld [vmem:[#allocation4 + $0x48] sm:$0xff]  ;;  %v104_v26 = vld [vmem:[%s2514_s1 + $0x8] sm:$0xf]  ;;  %v1770_v27 = vld [vmem:[#allocation4 + $0xd0] sm:$0xff] }
   0xf   :  { %v118_v8 = vld.sshfl [vmem:[#allocation1] sm:$0xff pattern:$0x75316420]  ;;  %310 = vmatpush.msra.mxu3 %v1696_v5  ;;  %v119_v24 = vld.sshfl [vmem:[#allocation1 + $0x8] sm:$0xff pattern:$0x75316420] }
  0x10   :  { %1396 = vmatpush.msk.msra.mxu0 %vm146_vm0, %v118_v8  ;;  %1439 = vmatpush.msk.msra.mxu2 %vm146_vm0, %v118_v8  ;;  %2546 = vst [vmem:[#allocation10_spill] sm:$0xff] %v1762_v25  ;;  %v1777_v28 = vld [vmem:[%s2513_s0 + $0x10] sm:$0xff]  ;;  %v1779_v29 = vld [vmem:[#allocation4 + $0x30] sm:$0xff]  ;;  %v1784_v30 = vld [vmem:[#allocation4 + $0xb8] sm:$0xff] }
  0x11   :  { %1397 = vmatmul.msk.f32.vlgmr.msra.gmra.mxu0 %vm121_vm1, %v1702_v6  ;;  %311 = vmatpush.msra.mxu3 %v1704_v7  ;;  %117 = vst [vmem:[#allocation1 + $0x10] ss:$2 sm:$0xff] %v104_v26  ;;  %v1788_v31 = vld [vmem:[#allocation4 + $0x18] sm:$0xff]  ;;  %v1795_v32 = vld [vmem:[#allocation4 + $0xa0] sm:$0xff]  ;;  %v1802_v34 = vld [vmem:[#allocation4 + $0x88] sm:$0xff] }
  0x12   :  { %346 = vmatpush.msrb.mxu0 %v1707_v9  ;;  %1404 = vmatmul.msk.f32.vlgmr.msra.gmra.mxu2 %vm121_vm1, %v1727_v14  ;;  %2547 = vst [vmem:[#allocation11_spill] sm:$0xff] %v1779_v29  ;;  %v1797_v33 = vld [vmem:[#allocation4] sm:$0xff]  ;;  %v1804_v35 = vld [vmem:[#allocation4 + $0x170] sm:$0xff]  ;;  %v1818_v40 = vld [vmem:[#allocation4 + $0x158] sm:$0xff] }
  0x13   :  { %312 = vmatpush.msra.mxu3 %v1710_v10  ;;  %1440 = vmatpush.msk.msrb.mxu2 %vm146_vm0, %v119_v24  ;;  %2548 = vst [vmem:[#allocation12_spill] sm:$0xff] %v1788_v31  ;;  %v1809_v37 = vld [vmem:[#allocation4 + $0x70] sm:$0xff]  ;;  %v1822_v41 = vld [vmem:[#allocation4 + $0x58] sm:$0xff]  ;;  %v1826_v42 = vld [vmem:[#allocation4 + $0x140] sm:$0xff] }
  0x14   :  { %347 = vmatpush.msrb.mxu0 %v1716_v11  ;;  %1405 = vmatpush.msk.msra.mxu1 %vm146_vm0, %v119_v24  ;;  %2549 = vst [vmem:[#allocation13_spill] sm:$0xff] %v1797_v33  ;;  %v1816_v39 = vld [vmem:[%s2513_s0 + $0x18] sm:$0xff]  ;;  %v1833_v43 = vld [vmem:[#allocation4 + $0x40] sm:$0xff]  ;;  %v1835_v44 = vld [vmem:[#allocation4 + $0x128] sm:$0xff] }
  0x15   :  { %313 = vmatpush.msra.mxu3 %v1718_v12  ;;  %1406 = vmatmul.msk.f32.vlgmr.msra.gmra.mxu1 %vm121_vm1, %v1702_v6  ;;  %2550 = vst [vmem:[#allocation14_spill] sm:$0xff] %v1833_v43  ;;  %v1840_v45 = vld [vmem:[#allocation4 + $0x28] sm:$0xff]  ;;  %v1844_v46 = vld [vmem:[#allocation4 + $0x110] sm:$0xff]  ;;  %v1855_v48 = vld [vmem:[%s2513_s0 + $0x20] sm:$0xff] }
  0x16   :  { %348 = vmatpush.msrb.mxu0 %v1722_v13  ;;  %421 = vmatpush.msrb.mxu1 %v1682_v0  ;;  %2551 = vst [vmem:[#allocation15_spill] sm:$0xff] %v1840_v45  ;;  %v1849_v47 = vld [vmem:[#allocation4 + $0x10] sm:$0xff]  ;;  %v1857_v49 = vld [vmem:[#allocation4 + $0xf8] sm:$0xff]  ;;  %v1864_v50 = vld [vmem:[#allocation4 + $0xe0] sm:$0xff] }
  0x17   :  { %314 = vmatpush.msra.mxu3 %v1729_v15  ;;  %2552 = vst [vmem:[#allocation16_spill] sm:$0xff] %v1849_v47  ;;  %v1871_v51 = vld [vmem:[#allocation4 + $0xc8] sm:$0xff]  ;;  %v1878_v52 = vld [vmem:[#allocation4 + $0xb0] sm:$0xff]  ;;  %v100_v53 = vld [vmem:[%s2513_s0 + $0x28] sm:$0xff] }
  0x18   :  { %349 = vmatpush.msrb.mxu0 %v1735_v16  ;;  %422 = vmatpush.msrb.mxu1 %v1684_v1  ;;  %v120_v36 = vld.sshfl [vmem:[#allocation1 + $0x10] sm:$0xff pattern:$0x75316420]  ;;  %v1887_v54 = vld [vmem:[#allocation4 + $0x98] sm:$0xff]  ;;  %v1894_v55 = vld [vmem:[#allocation4 + $0x80] sm:$0xff] }
  0x19   :  { %1398 = vmatmul.msk.f32.gmra.mxu0 %vm121_vm1, %v1740_v17  ;;  %315 = vmatpush.msra.mxu3 %v1742_v18  ;;  %v1900_v56 = vld [vmem:[#allocation4 + $0x68] sm:$0xff]  ;;  %v1907_v57 = vld [vmem:[#allocation4 + $0x50] sm:$0xff]  ;;  %v1916_v59 = vld [vmem:[#allocation4 + $0x38] sm:$0xff] }
  0x1a   :  { %350 = vmatpush.msrb.mxu0 %v1746_v19  ;;  %1413 = vmatmul.msk.f32.vlgmr.msrb.gmra.mxu2 %vm121_vm1, %v1727_v14  ;;  %2553 = vst [vmem:[#allocation17_spill] sm:$0xff] %v1907_v57  ;;  %v101_v58 = vld [vmem:[%s2513_s0 + $0x30] sm:$0xff]  ;;  %v1923_v60 = vld [vmem:[#allocation4 + $0x20] sm:$0xff]  ;;  %v105_v63 = vld [vmem:[%s2515_s2] sm:$0x7] }
  0x1b   :  { %316 = vmatpush.msra.mxu3 %v1748_v20  ;;  %423 = vmatpush.msrb.mxu1 %v1690_v3  ;;  %2554 = vst [vmem:[#allocation18_spill] sm:$0xff] %v1916_v59  ;;  %v1929_v61 = vld [vmem:[#allocation4 + $0x8] sm:$0xff]  ;;  %v107_v2 = vperm.slane %v105_v63, 0 }
  0x1c   :  { %351 = vmatpush.msrb.mxu0 %v1754_v21  ;;  %1414 = vmatpush.msk.msra.mxu2 %vm146_vm0, %v120_v36  ;;  %2555 = vst [vmem:[#allocation19_spill] sm:$0xff] %v1923_v60  ;;  %v1637_v36 = vmov 0  }
  0x1d   :  { %317 = vmatpush.msra.mxu3 %v1756_v22  ;;  %1407 = vmatmul.msk.f32.gmra.mxu1 %vm121_vm1, %v1740_v17  ;;  %2556 = vst [vmem:[#allocation20_spill] sm:$0xff] %v1929_v61 }
  0x1e   :  { %352 = vmatpush.msrb.mxu0 %v1760_v23  ;;  %441 = vmatpush.msrb.mxu2 %v1804_v35 }
  0x1f   :  { %318 = vmatpush.msra.mxu3 %v1762_v25  ;;  %424 = vmatpush.msrb.mxu1 %v1693_v4 }
  0x20   :  { %353 = vmatpush.msrb.mxu0 %v1770_v27  ;;  %442 = vmatpush.msrb.mxu2 %v1818_v40 }
  0x21   :  { %1399 = vmatmul.msk.f32.gmra.mxu0 %vm121_vm1, %v1777_v28  ;;  %319 = vmatpush.msra.mxu3 %v1779_v29 }
  0x22   :  { %354 = vmatpush.msrb.mxu0 %v1784_v30  ;;  %1415 = vmatmul.msk.f32.vlgmr.msra.gmra.mxu2 %vm121_vm1, %v1702_v6 }
  0x23   :  { %320 = vmatpush.msra.mxu3 %v1788_v31  ;;  %443 = vmatpush.msrb.mxu2 %v1826_v42 }
  0x24   :  { %355 = vmatpush.msrb.mxu0 %v1795_v32  ;;  %425 = vmatpush.msrb.mxu1 %v1696_v5 }
  0x25   :  { %321 = vmatpush.msra.mxu3 %v1797_v33  ;;  %444 = vmatpush.msrb.mxu2 %v1835_v44 }
  0x26   :  { %322 = vmatmul.f32.vlgmr.msra.gmra.mxu3 %v1636_v38  ;;  %356 = vmatpush.msrb.mxu0 %v1802_v34 }
  0x27   :  { %326 = vmatpush.msrb.mxu3 %v1804_v35  ;;  %445 = vmatpush.msrb.mxu2 %v1844_v46 }
  0x28   :  { %357 = vmatpush.msrb.mxu0 %v1809_v37  ;;  %1408 = vmatmul.msk.f32.gmra.mxu1 %vm121_vm1, %v1777_v28 }
  0x29   :  { %1400 = vmatmul.msk.f32.gmra.mxu0 %vm121_vm1, %v1816_v39  ;;  %327 = vmatpush.msrb.mxu3 %v1818_v40 }
  0x2a   :  { %358 = vmatpush.msrb.mxu0 %v1822_v41  ;;  %1416 = vmatmul.msk.f32.gmra.mxu2 %vm121_vm1, %v1740_v17 }
  0x2b   :  { %328 = vmatpush.msrb.mxu3 %v1826_v42  ;;  %446 = vmatpush.msrb.mxu2 %v1857_v49 }
  0x2c   :  { %359 = vmatpush.msrb.mxu0 %v1833_v43  ;;  %426 = vmatpush.msrb.mxu1 %v1704_v7 }
  0x2d   :  { %329 = vmatpush.msrb.mxu3 %v1835_v44  ;;  %447 = vmatpush.msrb.mxu2 %v1864_v50 }
  0x2e   :  { %360 = vmatpush.msrb.mxu0 %v1840_v45  ;;  %427 = vmatpush.msrb.mxu1 %v1710_v10 }
  0x2f   :  { %330 = vmatpush.msrb.mxu3 %v1844_v46  ;;  %448 = vmatpush.msrb.mxu2 %v1871_v51 }
  0x30   :  { %361 = vmatpush.msrb.mxu0 %v1849_v47  ;;  %428 = vmatpush.msrb.mxu1 %v1718_v12 }
  0x31   :  { %1401 = vmatmul.msk.f32.gmra.mxu0 %vm121_vm1, %v1855_v48  ;;  %331 = vmatpush.msrb.mxu3 %v1857_v49 }
  0x32   :  { %537 = vmatpush.msra.mxu0 %v1682_v0  ;;  %1417 = vmatmul.msk.f32.gmra.mxu2 %vm121_vm1, %v1777_v28  ;;  %v1284_v28 = vld [vmem:[%s2519_s6] sm:$0xff] }
  0x33   :  { %332 = vmatpush.msrb.mxu3 %v1864_v50  ;;  %449 = vmatpush.msrb.mxu2 %v1878_v52 }
  0x34   :  { %429 = vmatpush.msrb.mxu1 %v1729_v15  ;;  %538 = vmatpush.msra.mxu0 %v1684_v1 }
  0x35   :  { %333 = vmatpush.msrb.mxu3 %v1871_v51  ;;  %450 = vmatpush.msrb.mxu2 %v1887_v54 }
  0x36   :  { %1409 = vmatmul.msk.f32.gmra.mxu1 %vm121_vm1, %v1816_v39  ;;  %539 = vmatpush.msra.mxu0 %v1690_v3 }
  0x37   :  { %334 = vmatpush.msrb.mxu3 %v1878_v52  ;;  %430 = vmatpush.msrb.mxu1 %v1742_v18 }
  0x38   :  { %451 = vmatpush.msrb.mxu2 %v1894_v55  ;;  %540 = vmatpush.msra.mxu0 %v1693_v4 }
  0x39   :  { %1402 = vmatmul.msk.f32.gmra.mxu0 %vm121_vm1, %v100_v53  ;;  %335 = vmatpush.msrb.mxu3 %v1887_v54 }
  0x3a   :  { %431 = vmatpush.msrb.mxu1 %v1748_v20  ;;  %452 = vmatpush.msrb.mxu2 %v1900_v56 }
  0x3b   :  { %336 = vmatpush.msrb.mxu3 %v1894_v55  ;;  %1418 = vmatmul.msk.f32.gmra.mxu2 %vm121_vm1, %v1816_v39 }
  0x3c   :  { %432 = vmatpush.msrb.mxu1 %v1756_v22  ;;  %453 = vmatpush.msrb.mxu2 %v1907_v57 }
  0x3d   :  { %337 = vmatpush.msrb.mxu3 %v1900_v56  ;;  %541 = vmatpush.msra.mxu0 %v1696_v5 }
  0x3e   :  { %433 = vmatpush.msrb.mxu1 %v1762_v25  ;;  %454 = vmatpush.msrb.mxu2 %v1916_v59 }
  0x3f   :  { %338 = vmatpush.msrb.mxu3 %v1907_v57  ;;  %1410 = vmatmul.msk.f32.gmra.mxu1 %vm121_vm1, %v1855_v48 }
  0x40   :  { %434 = vmatpush.msrb.mxu1 %v1779_v29  ;;  %455 = vmatpush.msrb.mxu2 %v1923_v60 }
  0x41   :  { %1403 = vmatmul.msk.f32.gmra.mxu0 %vm121_vm1, %v101_v58  ;;  %339 = vmatpush.msrb.mxu3 %v1916_v59 }
  0x42   :  { %435 = vmatpush.msrb.mxu1 %v1788_v31  ;;  %456 = vmatpush.msrb.mxu2 %v1929_v61 }
  0x43   :  { %340 = vmatpush.msrb.mxu3 %v1923_v60  ;;  %1419 = vmatmul.msk.f32.gmra.mxu2 %vm121_vm1, %v1855_v48 }
  0x44   :  { %436 = vmatpush.msrb.mxu1 %v1797_v33  ;;  %577 = vmatpush.msra.mxu2 %v1707_v9 }
  0x45   :  { %341 = vmatpush.msrb.mxu3 %v1929_v61  ;;  %542 = vmatpush.msra.mxu0 %v1704_v7 }
  0x46   :  { %342 = vmatmul.f32.vlgmr.msrb.gmra.mxu3 %v1636_v38  ;;  %557 = vmatpush.msra.mxu1 %v1804_v35 }
  0x47   :  { %461 = vmatpush.msra.mxu3 %v1707_v9  ;;  %1411 = vmatmul.msk.f32.gmra.mxu1 %vm121_vm1, %v100_v53 }
  0x48   :  { %558 = vmatpush.msra.mxu1 %v1818_v40  ;;  %578 = vmatpush.msra.mxu2 %v1716_v11 }
  0x49   :  { %362 = vmatmul.f32.vlgmr.msrb.gmra.mxu0 %v1636_v38  ;;  %462 = vmatpush.msra.mxu3 %v1716_v11 }
  0x4a   :  { %559 = vmatpush.msra.mxu1 %v1826_v42  ;;  %579 = vmatpush.msra.mxu2 %v1722_v13 }
  0x4b   :  { %463 = vmatpush.msra.mxu3 %v1722_v13  ;;  %1420 = vmatmul.msk.f32.gmra.mxu2 %vm121_vm1, %v100_v53 }
  0x4c   :  { %560 = vmatpush.msra.mxu1 %v1835_v44  ;;  %580 = vmatpush.msra.mxu2 %v1735_v16 }
  0x4d   :  { %464 = vmatpush.msra.mxu3 %v1735_v16  ;;  %543 = vmatpush.msra.mxu0 %v1710_v10 }
  0x4e   :  { %561 = vmatpush.msra.mxu1 %v1844_v46  ;;  %581 = vmatpush.msra.mxu2 %v1746_v19 }
  0x4f   :  { %465 = vmatpush.msra.mxu3 %v1746_v19  ;;  %1412 = vmatmul.msk.f32.gmra.mxu1 %vm121_vm1, %v101_v58 }
  0x50   :  { %562 = vmatpush.msra.mxu1 %v1857_v49  ;;  %582 = vmatpush.msra.mxu2 %v1754_v21 }
  0x51   :  { %466 = vmatpush.msra.mxu3 %v1754_v21  ;;  %544 = vmatpush.msra.mxu0 %v1718_v12 }
  0x52   :  { %563 = vmatpush.msra.mxu1 %v1864_v50  ;;  %583 = vmatpush.msra.mxu2 %v1760_v23 }
  0x53   :  { %467 = vmatpush.msra.mxu3 %v1760_v23  ;;  %1421 = vmatmul.msk.f32.gmra.mxu2 %vm121_vm1, %v101_v58 }
  0x54   :  { %564 = vmatpush.msra.mxu1 %v1871_v51  ;;  %584 = vmatpush.msra.mxu2 %v1770_v27 }
  0x55   :  { %468 = vmatpush.msra.mxu3 %v1770_v27  ;;  %545 = vmatpush.msra.mxu0 %v1729_v15 }
  0x56   :  { %565 = vmatpush.msra.mxu1 %v1878_v52  ;;  %585 = vmatpush.msra.mxu2 %v1784_v30 }
  0x57   :  { %469 = vmatpush.msra.mxu3 %v1784_v30  ;;  %546 = vmatpush.msra.mxu0 %v1742_v18 }
  0x58   :  { %566 = vmatpush.msra.mxu1 %v1887_v54  ;;  %586 = vmatpush.msra.mxu2 %v1795_v32 }
  0x59   :  { %470 = vmatpush.msra.mxu3 %v1795_v32  ;;  %547 = vmatpush.msra.mxu0 %v1748_v20 }
  0x5a   :  { %567 = vmatpush.msra.mxu1 %v1894_v55  ;;  %587 = vmatpush.msra.mxu2 %v1802_v34 }
  0x5b   :  { %471 = vmatpush.msra.mxu3 %v1802_v34  ;;  %1422 = vmatmul.msk.f32.gmra.mxu2 %vm121_vm1, %v1727_v14 }
  0x5c   :  { %548 = vmatpush.msra.mxu0 %v1756_v22  ;;  %568 = vmatpush.msra.mxu1 %v1900_v56 }
  0x5d   :  { %472 = vmatpush.msra.mxu3 %v1809_v37  ;;  %588 = vmatpush.msra.mxu2 %v1809_v37 }
  0x5e   :  { %549 = vmatpush.msra.mxu0 %v1762_v25  ;;  %569 = vmatpush.msra.mxu1 %v1907_v57 }
  0x5f   :  { %473 = vmatpush.msra.mxu3 %v1822_v41  ;;  %589 = vmatpush.msra.mxu2 %v1822_v41 }
  0x60   :  { %550 = vmatpush.msra.mxu0 %v1779_v29  ;;  %570 = vmatpush.msra.mxu1 %v1916_v59 }
  0x61   :  { %474 = vmatpush.msra.mxu3 %v1833_v43  ;;  %590 = vmatpush.msra.mxu2 %v1833_v43 }
  0x62   :  { %551 = vmatpush.msra.mxu0 %v1788_v31  ;;  %571 = vmatpush.msra.mxu1 %v1923_v60 }
  0x63   :  { %475 = vmatpush.msra.mxu3 %v1840_v45  ;;  %591 = vmatpush.msra.mxu2 %v1840_v45 }
  0x64   :  { %552 = vmatpush.msra.mxu0 %v1797_v33  ;;  %572 = vmatpush.msra.mxu1 %v1929_v61 }
  0x65   :  { %476 = vmatpush.msra.mxu3 %v1849_v47  ;;  %592 = vmatpush.msra.mxu2 %v1849_v47 }
  0x66   :  { %673 = vmatpush.msrb.mxu0 %v1804_v35  ;;  %1447 = vset.pattern.permute.xlu0 %v1637_v36 }
  0x67   :  { %653 = vmatpush.msrb.mxu3 %v1682_v0  ;;  %1448 = vset.pattern.permute.xlu2 %v1637_v36 }
  0x68   :  { %674 = vmatpush.msrb.mxu0 %v1818_v40  ;;  %1287 = vperm.xlu0 %1447, %v1284_v28  }
  0x69   :  { %654 = vmatpush.msrb.mxu3 %v1684_v1  ;;  %1449 = vset.pattern.permute.xlu1 %v1637_v36 }
  0x6a   :  { %675 = vmatpush.msrb.mxu0 %v1826_v42 }
  0x6b   :  { %655 = vmatpush.msrb.mxu3 %v1690_v3 }
  0x6c   :  { %676 = vmatpush.msrb.mxu0 %v1835_v44 }
  0x6d   :  { %656 = vmatpush.msrb.mxu3 %v1693_v4 }
  0x6e   :  { %677 = vmatpush.msrb.mxu0 %v1844_v46 }
  0x6f   :  { %657 = vmatpush.msrb.mxu3 %v1696_v5 }
  0x70   :  { %678 = vmatpush.msrb.mxu0 %v1857_v49 }
  0x71   :  { %658 = vmatpush.msrb.mxu3 %v1704_v7 }
  0x72   :  { %679 = vmatpush.msrb.mxu0 %v1864_v50 }
  0x73   :  { %659 = vmatpush.msrb.mxu3 %v1710_v10 }
  0x74   :  { %680 = vmatpush.msrb.mxu0 %v1871_v51 }
  0x75   :  { %660 = vmatpush.msrb.mxu3 %v1718_v12 }
  0x76   :  { %681 = vmatpush.msrb.mxu0 %v1878_v52 }
  0x77   :  { %661 = vmatpush.msrb.mxu3 %v1729_v15 }
  0x78   :  { %682 = vmatpush.msrb.mxu0 %v1887_v54 }
  0x79   :  { %662 = vmatpush.msrb.mxu3 %v1742_v18 }
  0x7a   :  { %683 = vmatpush.msrb.mxu0 %v1894_v55 }
  0x7b   :  { %663 = vmatpush.msrb.mxu3 %v1748_v20 }
  0x7c   :  { %684 = vmatpush.msrb.mxu0 %v1900_v56 }
  0x7d   :  { %664 = vmatpush.msrb.mxu3 %v1756_v22 }
  0x7e   :  { %685 = vmatpush.msrb.mxu0 %v1907_v57 }
  0x7f   :  { %665 = vmatpush.msrb.mxu3 %v1762_v25 }
  0x80   :  { %686 = vmatpush.msrb.mxu0 %v1916_v59 }
  0x81   :  { %666 = vmatpush.msrb.mxu3 %v1779_v29 }
  0x82   :  { %687 = vmatpush.msrb.mxu0 %v1923_v60 }
  0x83   :  { %667 = vmatpush.msrb.mxu3 %v1788_v31 }
  0x84   :  { %688 = vmatpush.msrb.mxu0 %v1929_v61 }
  0x85   :  { %668 = vmatpush.msrb.mxu3 %v1797_v33 }
  0x8e   :  { %v170_v62 = vpop.f32.mrf.mxu0 }
  0x8f   :  { %v171_v48 = vadd.f32 %v170_v62, %v107_v2 }
  0x92   :  { %v211_v62 = vpop.f32.mrf.mxu1 }
  0x95   :  { %v191_v14 = vpop.f32.mrf.mxu2 }
  0x96   :  { %v173_v6 = vpop.f32.mrf.mxu0  ;;  %v2051_v17 = vadd.f32 %v191_v14, %v107_v2 }
  0x97   :  { %v2049_v8 = vadd.f32 %v173_v6, %v107_v2 }
  0x98   :  { %2558 = vst [vmem:[#allocation22_spill] sm:$0xff] %v2051_v17 }
  0x99   :  { %2557 = vst [vmem:[#allocation21_spill] sm:$0xff] %v2049_v8 }
  0x9d   :  { %v2069_v60 = vpop.f32.mrf.mxu2 }
  0x9e   :  { %v176_v24 = vpop.f32.mrf.mxu0  ;;  %2565 = vst [vmem:[#allocation29_spill] sm:$0xff] %v2069_v60 }
  0x9f   :  { %v2053_v26 = vadd.f32 %v176_v24, %v107_v2 }
  0xa1   :  { %2559 = vst [vmem:[#allocation23_spill] sm:$0xff] %v2053_v26 }
  0xa6   :  { %v179_v38 = vpop.f32.mrf.mxu0 }
  0xa7   :  { %v2058_v39 = vadd.f32 %v179_v38, %v107_v2  ;;  %v2066_v38 = vperm.slane %v105_v63, 1 }
  0xa9   :  { %2560 = vst [vmem:[#allocation24_spill] sm:$0xff] %v2058_v39  ;;  %v323_v53 = vpop.f32.mrf.mxu3 }
  0xaa   :  { %v366_v58 = vadd.f32 %v323_v53, %v171_v48  ;;  %2564 = vst [vmem:[#allocation28_spill] sm:$0xff] %v2066_v38  ;;  %v212_v48 = vadd.f32 %v211_v62, %v2066_v38 }
  0xac   :  { %v1423_v6 = vmul.f32 -1.442695, %v366_v58 }
  0xae   :  { %v182_v14 = vpop.f32.mrf.mxu0  ;;  %1451 = vpow2.f32 %v1423_v6 }
  0xaf   :  { %v2060_v24 = vadd.f32 %v182_v14, %v107_v2 }
  0xb1   :  { %2561 = vst [vmem:[#allocation25_spill] sm:$0xff] %v2060_v24 }
  0xb4   :  { %v1452_v17 = vpop.eup %1451 }
  0xb5   :  { %v370_v61 = vadd.f32 1.0, %v1452_v17 }
  0xb6   :  { %v185_v26 = vpop.f32.mrf.mxu0 }
  0xb7   :  { %v2062_v8 = vadd.f32 %v185_v26, %v107_v2  ;;  %1453 = vrcp.f32 %v370_v61  ;;  %v382_v26 = vand.u32 2147483648, %v370_v61  ;;  %vm376_vm3 = vweird.f32 %v370_v61 }
  0xb9   :  { %2562 = vst [vmem:[#allocation26_spill] sm:$0xff] %v2062_v8 }
  0xbd   :  { %v1454_v36 = vpop.eup %1453 }
  0xbe   :  { %v188_v33 = vpop.f32.mrf.mxu0  ;;  %v372_v39 = vmul.f32 %v1454_v36, %v370_v61  ;;  %vm377_vm2 = vweird.f32 %v1454_v36 }
  0xbf   :  { %v2064_v28 = vadd.f32 %v188_v33, %v107_v2  ;;  %v2074_v33 = vld [vmem:[%s2517_s4] ss:$0 sm:$0xff]  ;;  %v380_v2 = vand.u32 2147483647, %v370_v61  ;;  %vm378_vm4 = vmor %vm376_vm3, %vm377_vm2 }
  0xc0   :  { %v373_v53 = vsub.f32 1.0, %v372_v39 }
  0xc1   :  { %2563 = vst [vmem:[#allocation27_spill] sm:$0xff] %v2064_v28  ;;  %vm381_vm5 = vcmp.eq.f32.partialorder %v380_v2, 8.507059e+37  ;;  %v2083_v2 = vld [vmem:[%s2518_s5] sm:$0xff] }
  0xc2   :  { %v374_v24 = vmul.f32 %v1454_v36, %v373_v53 }
  0xc4   :  { %v375_v17 = vadd.f32 %v1454_v36, %v374_v24 }
  0xc6   :  { %v363_v62 = vpop.f32.mrf.mxu0  ;;  %v379_v39 = vsel %vm378_vm4, %v1454_v36, %v375_v17 }
  0xc7   :  { %v406_v53 = vadd.f32 %v2074_v33, %v363_v62 }
  0xc9   :  { %v343_v58 = vpop.f32.mrf.mxu3 }
  0xca   :  { %v386_v6 = vadd.f32 %v343_v58, %v212_v48  ;;  %v383_v58 = vor.u32 1.1754944e-38, %v382_v26 }
  0xcc   :  { %v1424_v14 = vmul.f32 -1.442695, %v386_v6  ;;  %v2077_v6 = vperm.slane %v105_v63, 2  ;;  %v384_v24 = vsel %vm381_vm5, %v383_v58, %v379_v39  ;;  %v2569_v58 = vld [vmem:[#allocation16_spill] sm:$0xff] }
  0xcd   :  { %v407_v60 = vmul.f32 %v406_v53, %v384_v24  ;;  %v2570_v53 = vld [vmem:[#allocation19_spill] sm:$0xff]  ;;  %v2571_v24 = vld [vmem:[#allocation13_spill] sm:$0xff] }
  0xce   :  { %1455 = vpow2.f32 %v1424_v14  ;;  %v252_v14 = vpop.f32.mrf.mxu2 }
  0xcf   :  { %v253_v8 = vadd.f32 %v252_v14, %v2077_v6  ;;  %v2572_v14 = vld [vmem:[#allocation20_spill] sm:$0xff] }
  0xd1   :  { %v408_v61 = vadd.f32 %v407_v60, %v253_v8 }
  0xd4   :  { %v1456_v28 = vpop.eup %1455 }
  0xd5   :  { %v390_v48 = vadd.f32 1.0, %v1456_v28 }
  0xd7   :  { %1457 = vrcp.f32 %v390_v48  ;;  %v402_v59 = vand.u32 2147483648, %v390_v48  ;;  %v400_v28 = vand.u32 2147483647, %v390_v48  ;;  %vm396_vm7 = vweird.f32 %v390_v48 }
  0xd8   :  { %1459 = vtanh.f32 %v408_v61  ;;  %v255_v61 = vpop.f32.mrf.mxu2 }
  0xd9   :  { %v403_v63 = vor.u32 1.1754944e-38, %v402_v59  ;;  %vm401_vm9 = vcmp.eq.f32.partialorder %v400_v28, 8.507059e+37  ;;  %v2566_v59 = vld [vmem:[#allocation15_spill] sm:$0xff]  ;;  %v214_v28 = vpop.f32.mrf.mxu1 }
  0xdd   :  { %v1458_v38 = vpop.eup %1457 }
  0xde   :  { %v392_v47 = vmul.f32 %v1458_v38, %v390_v48  ;;  %vm397_vm6 = vweird.f32 %v1458_v38  ;;  %v1460_v60 = vpop.eup %1459  ;;  %v2568_v48 = vld [vmem:[#allocation12_spill] sm:$0xff] }
  0xdf   :  { %vm398_vm8 = vmor %vm396_vm7, %vm397_vm6 }
  0xe0   :  { %v393_v31 = vsub.f32 1.0, %v392_v47 }
  0xe2   :  { %v394_v45 = vmul.f32 %v1458_v38, %v393_v31  ;;  %v1244_v31 = vperm.slane %v2083_v2, 0 }
  0xe4   :  { %v395_v36 = vadd.f32 %v1458_v38, %v394_v45 }
  0xe6   :  { %v399_v17 = vsel %vm398_vm8, %v1458_v38, %v395_v36  ;;  %v2567_v38 = vld [vmem:[#allocation18_spill] sm:$0xff]  ;;  %v2140_v36 = vpop.f32.mrf.mxu2 }
  0xe7   :  { %v404_v26 = vsel %vm401_vm9, %v403_v63, %v399_v17  ;;  %2573 = vst [vmem:[#allocation30_spill] sm:$0xff] %v2140_v36  ;;  %v2142_v63 = vpop.f32.mrf.mxu1 }
  0xe8   :  { %v410_v62 = vsub.f32 1.0, %v404_v26  ;;  %v412_v8 = vmul.f32 0.0, %v404_v26  ;;  %2574 = vst [vmem:[#allocation31_spill] sm:$0xff] %v2142_v63 }
  0xea   :  { %v411_v47 = vmul.f32 %v1460_v60, %v410_v62 }
  0xec   :  { %v2086_v39 = vadd.f32 %v412_v8, %v411_v47 }
  0xee   :  { %437 = vmatmul.f32.vlgmr.msrb.gmra.mxu1 %v2086_v39  ;;  %457 = vmatmul.f32.vlgmr.msrb.gmra.mxu2 %v2086_v39  ;;  %v1260_v45 = vmul.f32 %v1244_v31, %v2086_v39  ;;  %v2144_v17 = vpop.f32.mrf.mxu2  ;;  %v2156_v31 = vpop.permute.xlu0 %1287 }
  0xef   :  { %477 = vmatmul.f32.vlgmr.msra.gmra.mxu3 %v2086_v39  ;;  %693 = vmatpush.msrb.mxu1 %v1707_v9  ;;  %2575 = vst [vmem:[#allocation32_spill] sm:$0xff] %v2144_v17  ;;  %v2146_v26 = vpop.f32.mrf.mxu1  ;;  %v1289_v36 = vperm.slane %v2156_v31, 0 }
  0xf0   :  { %1268 = vadd.xlane.f32.xlu0 %v1260_v45  ;;  %769 = vmatpush.msrb.mxu2 %v1682_v0  ;;  %2576 = vst [vmem:[#allocation33_spill] sm:$0xff] %v2146_v26 }
  0xf1   :  { %694 = vmatpush.msrb.mxu1 %v1716_v11  ;;  %789 = vmatpush.msra.mxu3 %v1804_v35  ;;  %2581 = vst [vmem:[#allocation38_spill] sm:$0xff] %v2156_v31 }
  0xf2   :  { %770 = vmatpush.msrb.mxu2 %v1684_v1 }
  0xf3   :  { %695 = vmatpush.msrb.mxu1 %v1722_v13  ;;  %790 = vmatpush.msra.mxu3 %v1818_v40 }
  0xf4   :  { %771 = vmatpush.msrb.mxu2 %v1690_v3 }
  0xf5   :  { %696 = vmatpush.msrb.mxu1 %v1735_v16  ;;  %791 = vmatpush.msra.mxu3 %v1826_v42 }
  0xf6   :  { %772 = vmatpush.msrb.mxu2 %v1693_v4  ;;  %v2148_v62 = vpop.f32.mrf.mxu2 }
  0xf7   :  { %697 = vmatpush.msrb.mxu1 %v1746_v19  ;;  %792 = vmatpush.msra.mxu3 %v1835_v44  ;;  %2577 = vst [vmem:[#allocation34_spill] sm:$0xff] %v2148_v62  ;;  %v2150_v60 = vpop.f32.mrf.mxu1 }
  0xf8   :  { %773 = vmatpush.msrb.mxu2 %v1696_v5  ;;  %2578 = vst [vmem:[#allocation35_spill] sm:$0xff] %v2150_v60 }
  0xf9   :  { %698 = vmatpush.msrb.mxu1 %v1754_v21  ;;  %793 = vmatpush.msra.mxu3 %v1844_v46 }
  0xfa   :  { %774 = vmatpush.msrb.mxu2 %v1704_v7 }
  0xfb   :  { %699 = vmatpush.msrb.mxu1 %v1760_v23  ;;  %794 = vmatpush.msra.mxu3 %v1857_v49 }
  0xfc   :  { %775 = vmatpush.msrb.mxu2 %v1710_v10 }
  0xfd   :  { %700 = vmatpush.msrb.mxu1 %v1770_v27  ;;  %795 = vmatpush.msra.mxu3 %v1864_v50 }
  0xfe   :  { %776 = vmatpush.msrb.mxu2 %v1718_v12  ;;  %v2152_v47 = vpop.f32.mrf.mxu2 }
  0xff   :  { %701 = vmatpush.msrb.mxu1 %v1784_v30  ;;  %796 = vmatpush.msra.mxu3 %v1871_v51  ;;  %2579 = vst [vmem:[#allocation36_spill] sm:$0xff] %v2152_v47  ;;  %v2154_v8 = vpop.f32.mrf.mxu1  ;;  %v2586_v47 = vld [vmem:[#allocation28_spill] sm:$0xff] }
 0x100   :  { %777 = vmatpush.msrb.mxu2 %v1729_v15  ;;  %2580 = vst [vmem:[#allocation37_spill] sm:$0xff] %v2154_v8 }
 0x101   :  { %702 = vmatpush.msrb.mxu1 %v1795_v32  ;;  %797 = vmatpush.msra.mxu3 %v1878_v52 }
 0x102   :  { %778 = vmatpush.msrb.mxu2 %v1742_v18 }
 0x103   :  { %703 = vmatpush.msrb.mxu1 %v1802_v34  ;;  %798 = vmatpush.msra.mxu3 %v1887_v54 }
 0x104   :  { %779 = vmatpush.msrb.mxu2 %v1748_v20 }
 0x105   :  { %704 = vmatpush.msrb.mxu1 %v1809_v37  ;;  %799 = vmatpush.msra.mxu3 %v1894_v55 }
 0x106   :  { %780 = vmatpush.msrb.mxu2 %v1756_v22  ;;  %v2158_v45 = vpop.f32.mrf.mxu2 }
 0x107   :  { %705 = vmatpush.msrb.mxu1 %v1822_v41  ;;  %800 = vmatpush.msra.mxu3 %v1900_v56  ;;  %2582 = vst [vmem:[#allocation39_spill] sm:$0xff] %v2158_v45 }
 0x108   :  { %781 = vmatpush.msrb.mxu2 %v1762_v25 }
 0x109   :  { %706 = vmatpush.msrb.mxu1 %v1833_v43  ;;  %801 = vmatpush.msra.mxu3 %v1907_v57 }
 0x10a   :  { %782 = vmatpush.msrb.mxu2 %v1779_v29 }
 0x10b   :  { %707 = vmatpush.msrb.mxu1 %v2566_v59  ;;  %802 = vmatpush.msra.mxu3 %v2567_v38 }
 0x10c   :  { %783 = vmatpush.msrb.mxu2 %v2568_v48 }
 0x10d   :  { %708 = vmatpush.msrb.mxu1 %v2569_v58  ;;  %803 = vmatpush.msra.mxu3 %v2570_v53  ;;  %v215_v58 = vadd.f32 %v214_v28, %v2586_v47 }
 0x10e   :  { %784 = vmatpush.msrb.mxu2 %v2571_v24  ;;  %v2163_v26 = vpop.f32.mrf.mxu2  ;;  %v2585_v24 = vld [vmem:[#allocation21_spill] sm:$0xff] }
 0x10f   :  { %804 = vmatpush.msra.mxu3 %v2572_v14  ;;  %v2161_v14 = vpop.f32.mrf.mxu1  ;;  %2584 = vst [vmem:[#allocation41_spill] sm:$0xff] %v2163_v26 }
 0x110   :  { %2583 = vst [vmem:[#allocation40_spill] sm:$0xff] %v2161_v14 }
 0x163   :  { %v1269_v63 = vpop.xlane.xlu0 %1268 }
 0x164   :  { %v1305_v17 = vadd.f32 %v1289_v36, %v1269_v63 }
 0x166   :  { %1322 = vperm.xlu2 %1448, %v1305_v17  }
 0x16b   :  { %v438_v62 = vpop.f32.mrf.mxu1 }
 0x16c   :  { %v481_v60 = vadd.f32 %v438_v62, %v2585_v24 }
 0x16e   :  { %v1425_v53 = vmul.f32 -1.442695, %v481_v60 }
 0x170   :  { %1461 = vpow2.f32 %v1425_v53 }
 0x171   :  { %v458_v8 = vpop.f32.mrf.mxu2 }
 0x172   :  { %v501_v48 = vadd.f32 %v458_v8, %v215_v58  ;;  %v478_v28 = vpop.f32.mrf.mxu3  ;;  %v256_v8 = vadd.f32 %v255_v61, %v2077_v6 }
 0x174   :  { %v1426_v38 = vmul.f32 -1.442695, %v501_v48 }
 0x176   :  { %v1462_v45 = vpop.eup %1461  ;;  %1463 = vpow2.f32 %v1426_v38 }
 0x177   :  { %v485_v31 = vadd.f32 1.0, %v1462_v45 }
 0x179   :  { %1465 = vrcp.f32 %v485_v31  ;;  %v497_v26 = vand.u32 2147483648, %v485_v31  ;;  %v495_v24 = vand.u32 2147483647, %v485_v31  ;;  %vm491_vm11 = vweird.f32 %v485_v31 }
 0x17b   :  { %v498_v48 = vor.u32 1.1754944e-38, %v497_v26  ;;  %vm496_vm13 = vcmp.eq.f32.partialorder %v495_v24, 8.507059e+37 }
 0x17c   :  { %v1464_v14 = vpop.eup %1463 }
 0x17d   :  { %v505_v59 = vadd.f32 1.0, %v1464_v14  ;;  %v521_v14 = vadd.f32 %v2074_v33, %v478_v28 }
 0x17f   :  { %v1466_v36 = vpop.eup %1465  ;;  %1467 = vrcp.f32 %v505_v59  ;;  %v515_v57 = vand.u32 2147483647, %v505_v59  ;;  %vm511_vm15 = vweird.f32 %v505_v59 }
 0x180   :  { %v487_v63 = vmul.f32 %v1466_v36, %v485_v31  ;;  %vm492_vm10 = vweird.f32 %v1466_v36 }
 0x181   :  { %vm493_vm12 = vmor %vm491_vm11, %vm492_vm10  ;;  %vm516_vm1 = vcmp.eq.f32.partialorder %v515_v57, 8.507059e+37 }
 0x182   :  { %v488_v17 = vsub.f32 1.0, %v487_v63 }
 0x184   :  { %v489_v29 = vmul.f32 %v1466_v36, %v488_v17  ;;  %v517_v17 = vand.u32 2147483648, %v505_v59 }
 0x185   :  { %v1468_v62 = vpop.eup %1467 }
 0x186   :  { %v507_v53 = vmul.f32 %v1468_v62, %v505_v59  ;;  %v490_v60 = vadd.f32 %v1466_v36, %v489_v29  ;;  %vm512_vm14 = vweird.f32 %v1468_v62  ;;  %v518_v29 = vor.u32 1.1754944e-38, %v517_v17 }
 0x187   :  { %vm513_vm0 = vmor %vm511_vm15, %vm512_vm14 }
 0x188   :  { %v508_v38 = vsub.f32 1.0, %v507_v53  ;;  %v494_v58 = vsel %vm493_vm12, %v1466_v36, %v490_v60  ;;  %v1237_v36 = vrot.slane %v2083_v2, 1 }
 0x189   :  { %v499_v45 = vsel %vm496_vm13, %v498_v48, %v494_v58 }
 0x18a   :  { %v509_v63 = vmul.f32 %v1468_v62, %v508_v38  ;;  %v522_v47 = vmul.f32 %v521_v14, %v499_v45  ;;  %v1245_v60 = vperm.slane %v1237_v36, 0 }
 0x18c   :  { %v510_v43 = vadd.f32 %v1468_v62, %v509_v63  ;;  %v523_v25 = vadd.f32 %v522_v47, %v256_v8 }
 0x18e   :  { %v514_v31 = vsel %vm513_vm0, %v1468_v62, %v510_v43  ;;  %1469 = vtanh.f32 %v523_v25 }
 0x18f   :  { %v519_v26 = vsel %vm516_vm1, %v518_v29, %v514_v31  ;;  %v2602_v31 = vld [vmem:[#allocation30_spill] sm:$0xff] }
 0x190   :  { %v525_v24 = vsub.f32 1.0, %v519_v26  ;;  %v527_v53 = vmul.f32 %v519_v26, %v2086_v39  ;;  %v259_v26 = vadd.f32 %v2602_v31, %v2077_v6 }
 0x194   :  { %v1470_v28 = vpop.eup %1469 }
 0x195   :  { %v526_v61 = vmul.f32 %v1470_v28, %v525_v24 }
 0x197   :  { %v2171_v48 = vadd.f32 %v527_v53, %v526_v61 }
 0x199   :  { %553 = vmatmul.f32.vlgmr.msra.gmra.mxu0 %v2171_v48  ;;  %573 = vmatmul.f32.vlgmr.msra.gmra.mxu1 %v2171_v48  ;;  %v1261_v59 = vmul.f32 %v1245_v60, %v2171_v48 }
 0x19a   :  { %593 = vmatmul.f32.vlgmr.msra.gmra.mxu2 %v2171_v48  ;;  %809 = vmatpush.msra.mxu0 %v1707_v9  ;;  %v2593_v9 = vld [vmem:[#allocation12_spill] sm:$0xff] }
 0x19b   :  { %1270 = vadd.xlane.f32.xlu1 %v1261_v59  ;;  %885 = vmatpush.msra.mxu1 %v1682_v0  ;;  %v2587_v0 = vld [vmem:[#allocation10_spill] sm:$0xff] }
 0x19c   :  { %810 = vmatpush.msra.mxu0 %v1716_v11  ;;  %905 = vmatpush.msra.mxu2 %v1804_v35  ;;  %v2595_v11 = vld [vmem:[#allocation19_spill] sm:$0xff] }
 0x19d   :  { %886 = vmatpush.msra.mxu1 %v1684_v1  ;;  %v2588_v1 = vld [vmem:[#allocation14_spill] sm:$0xff] }
 0x19e   :  { %811 = vmatpush.msra.mxu0 %v1722_v13  ;;  %906 = vmatpush.msra.mxu2 %v1818_v40  ;;  %v2597_v13 = vld [vmem:[#allocation20_spill] sm:$0xff] }
 0x19f   :  { %887 = vmatpush.msra.mxu1 %v1690_v3  ;;  %v2589_v3 = vld [vmem:[#allocation17_spill] sm:$0xff] }
 0x1a0   :  { %812 = vmatpush.msra.mxu0 %v1735_v16  ;;  %907 = vmatpush.msra.mxu2 %v1826_v42 }
 0x1a1   :  { %888 = vmatpush.msra.mxu1 %v1693_v4  ;;  %v2590_v4 = vld [vmem:[#allocation11_spill] sm:$0xff] }
 0x1a2   :  { %813 = vmatpush.msra.mxu0 %v1746_v19  ;;  %908 = vmatpush.msra.mxu2 %v1835_v44 }
 0x1a3   :  { %889 = vmatpush.msra.mxu1 %v1696_v5  ;;  %v2591_v5 = vld [vmem:[#allocation15_spill] sm:$0xff] }
 0x1a4   :  { %814 = vmatpush.msra.mxu0 %v1754_v21  ;;  %909 = vmatpush.msra.mxu2 %v1844_v46  ;;  %v2600_v21 = vld [vmem:[#allocation31_spill] sm:$0xff] }
 0x1a5   :  { %890 = vmatpush.msra.mxu1 %v1704_v7  ;;  %v2592_v7 = vld [vmem:[#allocation18_spill] sm:$0xff] }
 0x1a6   :  { %815 = vmatpush.msra.mxu0 %v1760_v23  ;;  %910 = vmatpush.msra.mxu2 %v1857_v49 }
 0x1a7   :  { %891 = vmatpush.msra.mxu1 %v1710_v10  ;;  %v2594_v10 = vld [vmem:[#allocation16_spill] sm:$0xff] }
 0x1a8   :  { %816 = vmatpush.msra.mxu0 %v1770_v27  ;;  %911 = vmatpush.msra.mxu2 %v1864_v50  ;;  %v2601_v27 = vld [vmem:[#allocation23_spill] sm:$0xff] }
 0x1a9   :  { %892 = vmatpush.msra.mxu1 %v1718_v12  ;;  %v2596_v12 = vld [vmem:[#allocation13_spill] sm:$0xff] }
 0x1aa   :  { %817 = vmatpush.msra.mxu0 %v1784_v30  ;;  %912 = vmatpush.msra.mxu2 %v1871_v51 }
 0x1ab   :  { %893 = vmatpush.msra.mxu1 %v1729_v15  ;;  %v2598_v15 = vld [vmem:[#allocation38_spill] sm:$0xff] }
 0x1ac   :  { %818 = vmatpush.msra.mxu0 %v1795_v32  ;;  %913 = vmatpush.msra.mxu2 %v1878_v52  ;;  %v1290_v16 = vperm.slane %v2598_v15, 1 }
 0x1ad   :  { %894 = vmatpush.msra.mxu1 %v1742_v18 }
 0x1ae   :  { %819 = vmatpush.msra.mxu0 %v1802_v34  ;;  %914 = vmatpush.msra.mxu2 %v1887_v54 }
 0x1af   :  { %895 = vmatpush.msra.mxu1 %v1748_v20  ;;  %v2599_v20 = vld [vmem:[#allocation28_spill] sm:$0xff] }
 0x1b0   :  { %820 = vmatpush.msra.mxu0 %v1809_v37  ;;  %915 = vmatpush.msra.mxu2 %v1894_v55 }
 0x1b1   :  { %896 = vmatpush.msra.mxu1 %v1756_v22  ;;  %v218_v22 = vadd.f32 %v2600_v21, %v2599_v20  ;;  %v2249_v21 = vld [vmem:[#allocation4 + $0x170] sm:$0xff] }
 0x1b2   :  { %821 = vmatpush.msra.mxu0 %v1822_v41  ;;  %916 = vmatpush.msra.mxu2 %v1900_v56 }
 0x1b3   :  { %897 = vmatpush.msra.mxu1 %v2587_v0  ;;  %v1238_v0 = vrot.slane %v2083_v2, 2 }
 0x1b4   :  { %822 = vmatpush.msra.mxu0 %v2588_v1  ;;  %917 = vmatpush.msra.mxu2 %v2589_v3 }
 0x1b5   :  { %898 = vmatpush.msra.mxu1 %v2590_v4 }
 0x1b6   :  { %823 = vmatpush.msra.mxu0 %v2591_v5  ;;  %918 = vmatpush.msra.mxu2 %v2592_v7 }
 0x1b7   :  { %899 = vmatpush.msra.mxu1 %v2593_v9 }
 0x1b8   :  { %824 = vmatpush.msra.mxu0 %v2594_v10  ;;  %919 = vmatpush.msra.mxu2 %v2595_v11  ;;  %v1246_v10 = vperm.slane %v1238_v0, 0 }
 0x1b9   :  { %900 = vmatpush.msra.mxu1 %v2596_v12 }
 0x1ba   :  { %920 = vmatpush.msra.mxu2 %v2597_v13 }
 0x20e   :  { %v1271_v18 = vpop.xlane.xlu1 %1270 }
 0x20f   :  { %v1306_v19 = vadd.f32 %v1290_v16, %v1271_v18  ;;  %v2240_v18 = vld [vmem:[#allocation4 + $0x178] sm:$0xff] }
 0x211   :  { %1325 = vperm.xlu1 %1449, %v1306_v19   ;;  %v2243_v19 = vld [vmem:[#allocation4 + $0x168] sm:$0xff] }
 0x216   :  { %v554_v23 = vpop.f32.mrf.mxu0  ;;  %v574_v25 = vpop.f32.mrf.mxu1 }
 0x217   :  { %v597_v30 = vadd.f32 %v554_v23, %v2601_v27  ;;  %v617_v32 = vadd.f32 %v574_v25, %v218_v22  ;;  %v2252_v22 = vld [vmem:[#allocation4 + $0x150] sm:$0xff]  ;;  %v2255_v23 = vld [vmem:[#allocation4 + $0x148] sm:$0xff]  ;;  %v2258_v25 = vld [vmem:[#allocation4 + $0x158] sm:$0xff] }
 0x218   :  { %v2261_v27 = vld [vmem:[#allocation4 + $0x138] sm:$0xff] }
 0x219   :  { %v1427_v34 = vmul.f32 -1.442695, %v597_v30  ;;  %v1428_v35 = vmul.f32 -1.442695, %v617_v32  ;;  %v2264_v30 = vld [vmem:[#allocation4 + $0x130] sm:$0xff]  ;;  %v2267_v32 = vld [vmem:[#allocation4 + $0x140] sm:$0xff] }
 0x21b   :  { %1471 = vpow2.f32 %v1427_v34  ;;  %v2270_v34 = vld [vmem:[#allocation4 + $0x120] sm:$0xff] }
 0x21c   :  { %1473 = vpow2.f32 %v1428_v35  ;;  %v2273_v35 = vld [vmem:[#allocation4 + $0x118] sm:$0xff] }
 0x21d   :  { %v594_v58 = vpop.f32.mrf.mxu2 }
 0x21e   :  { %v637_v63 = vadd.f32 %v2074_v33, %v594_v58  ;;  %v2320_v58 = vld [vmem:[#allocation4 + $0x90] sm:$0xff] }
 0x221   :  { %v1472_v37 = vpop.eup %1471 }
 0x222   :  { %v1474_v40 = vpop.eup %1473  ;;  %v601_v41 = vadd.f32 1.0, %v1472_v37  ;;  %v2276_v37 = vld [vmem:[#allocation4 + $0x128] sm:$0xff] }
 0x223   :  { %v621_v42 = vadd.f32 1.0, %v1474_v40  ;;  %v2279_v40 = vld [vmem:[#allocation4 + $0x108] sm:$0xff] }
 0x224   :  { %1475 = vrcp.f32 %v601_v41  ;;  %v613_v39 = vand.u32 2147483648, %v601_v41  ;;  %v611_v62 = vand.u32 2147483647, %v601_v41  ;;  %vm607_vm3 = vweird.f32 %v601_v41 }
 0x225   :  { %1477 = vrcp.f32 %v621_v42  ;;  %v633_v36 = vand.u32 2147483648, %v621_v42  ;;  %vm627_vm7 = vweird.f32 %v621_v42  ;;  %v631_v28 = vand.u32 2147483647, %v621_v42 }
 0x226   :  { %v614_v8 = vor.u32 1.1754944e-38, %v613_v39  ;;  %vm612_vm5 = vcmp.eq.f32.partialorder %v611_v62, 8.507059e+37  ;;  %v2306_v39 = vld [vmem:[#allocation4 + $0xc0] sm:$0xff]  ;;  %v2313_v62 = vld [vmem:[#allocation4 + $0xa8] sm:$0xff] }
 0x227   :  { %v634_v60 = vor.u32 1.1754944e-38, %v633_v36  ;;  %vm632_vm9 = vcmp.eq.f32.partialorder %v631_v28, 8.507059e+37 }
 0x22a   :  { %v1476_v43 = vpop.eup %1475 }
 0x22b   :  { %v1478_v44 = vpop.eup %1477  ;;  %v603_v46 = vmul.f32 %v1476_v43, %v601_v41  ;;  %vm608_vm2 = vweird.f32 %v1476_v43  ;;  %v2282_v41 = vld [vmem:[#allocation4 + $0x100] sm:$0xff] }
 0x22c   :  { %v623_v49 = vmul.f32 %v1478_v44, %v621_v42  ;;  %vm609_vm4 = vmor %vm607_vm3, %vm608_vm2  ;;  %vm628_vm6 = vweird.f32 %v1478_v44  ;;  %v2285_v42 = vld [vmem:[#allocation4 + $0x110] sm:$0xff] }
 0x22d   :  { %v604_v50 = vsub.f32 1.0, %v603_v46  ;;  %vm629_vm8 = vmor %vm627_vm7, %vm628_vm6  ;;  %v2294_v46 = vld [vmem:[#allocation4 + $0xf8] sm:$0xff] }
 0x22e   :  { %v624_v57 = vsub.f32 1.0, %v623_v49  ;;  %v2297_v49 = vld [vmem:[#allocation4 + $0xd8] sm:$0xff] }
 0x22f   :  { %v605_v47 = vmul.f32 %v1476_v43, %v604_v50  ;;  %v2300_v50 = vld [vmem:[#allocation4 + $0xd0] sm:$0xff] }
 0x230   :  { %v625_v38 = vmul.f32 %v1478_v44, %v624_v57  ;;  %v2303_v57 = vld [vmem:[#allocation4 + $0xe0] sm:$0xff] }
 0x231   :  { %v606_v14 = vadd.f32 %v1476_v43, %v605_v47  ;;  %v2309_v47 = vld [vmem:[#allocation4 + $0xb8] sm:$0xff] }
 0x232   :  { %v626_v17 = vadd.f32 %v1478_v44, %v625_v38  ;;  %v2316_v38 = vld [vmem:[#allocation4 + $0xa0] sm:$0xff] }
 0x233   :  { %v610_v45 = vsel %vm609_vm4, %v1476_v43, %v606_v14  ;;  %v2288_v43 = vld [vmem:[#allocation4 + $0xf0] sm:$0xff]  ;;  %v2323_v14 = vld [vmem:[#allocation4 + $0x88] sm:$0xff] }
 0x234   :  { %v615_v29 = vsel %vm612_vm5, %v614_v8, %v610_v45  ;;  %v630_v53 = vsel %vm629_vm8, %v1478_v44, %v626_v17  ;;  %v2291_v44 = vld [vmem:[#allocation4 + $0xe8] sm:$0xff]  ;;  %v2330_v8 = vld [vmem:[#allocation4 + $0x70] sm:$0xff]  ;;  %v2337_v45 = vld [vmem:[#allocation4 + $0x58] sm:$0xff] }
 0x235   :  { %v638_v24 = vmul.f32 %v637_v63, %v615_v29  ;;  %v635_v59 = vsel %vm632_vm9, %v634_v60, %v630_v53  ;;  %v2344_v63 = vld [vmem:[#allocation4 + $0x40] sm:$0xff]  ;;  %v2351_v17 = vld [vmem:[#allocation4 + $0x28] sm:$0xff]  ;;  %v2358_v29 = vld [vmem:[#allocation4 + $0x10] sm:$0xff] }
 0x236   :  { %v641_v1 = vsub.f32 1.0, %v635_v59  ;;  %v643_v9 = vmul.f32 %v635_v59, %v2171_v48  ;;  %v2246_v48 = vld [vmem:[#allocation4 + $0x160] sm:$0xff]  ;;  %v2605_v59 = vld [vmem:[#allocation24_spill] sm:$0xff] }
 0x237   :  { %v639_v61 = vadd.f32 %v638_v24, %v259_v26  ;;  %v2604_v24 = vld [vmem:[#allocation33_spill] sm:$0xff] }
 0x238   :  { %v221_v28 = vadd.f32 %v2604_v24, %v2599_v20 }
 0x239   :  { %1479 = vtanh.f32 %v639_v61 }
 0x23f   :  { %v1480_v4 = vpop.eup %1479 }
 0x240   :  { %v642_v5 = vmul.f32 %v1480_v4, %v641_v1 }
 0x242   :  { %v2234_v12 = vadd.f32 %v643_v9, %v642_v5 }
 0x244   :  { %669 = vmatmul.f32.vlgmr.msrb.gmra.mxu3 %v2234_v12  ;;  %689 = vmatmul.f32.vlgmr.msrb.gmra.mxu0 %v2234_v12  ;;  %v1262_v16 = vmul.f32 %v1246_v10, %v2234_v12 }
 0x245   :  { %709 = vmatmul.f32.vlgmr.msrb.gmra.mxu1 %v2234_v12  ;;  %925 = vmatpush.msrb.mxu3 %v2240_v18 }
 0x246   :  { %1272 = vadd.xlane.f32.xlu1 %v1262_v16  ;;  %1001 = vmatpush.msrb.mxu0 %v2243_v19 }
 0x247   :  { %926 = vmatpush.msrb.mxu3 %v2246_v48  ;;  %1021 = vmatpush.msrb.mxu1 %v2249_v21 }
 0x248   :  { %1002 = vmatpush.msrb.mxu0 %v2252_v22 }
 0x249   :  { %927 = vmatpush.msrb.mxu3 %v2255_v23  ;;  %1022 = vmatpush.msrb.mxu1 %v2258_v25 }
 0x24a   :  { %1003 = vmatpush.msrb.mxu0 %v2261_v27 }
 0x24b   :  { %928 = vmatpush.msrb.mxu3 %v2264_v30  ;;  %1023 = vmatpush.msrb.mxu1 %v2267_v32 }
 0x24c   :  { %1004 = vmatpush.msrb.mxu0 %v2270_v34 }
 0x24d   :  { %929 = vmatpush.msrb.mxu3 %v2273_v35  ;;  %1024 = vmatpush.msrb.mxu1 %v2276_v37 }
 0x24e   :  { %1005 = vmatpush.msrb.mxu0 %v2279_v40 }
 0x24f   :  { %930 = vmatpush.msrb.mxu3 %v2282_v41  ;;  %1025 = vmatpush.msrb.mxu1 %v2285_v42 }
 0x250   :  { %1006 = vmatpush.msrb.mxu0 %v2288_v43 }
 0x251   :  { %931 = vmatpush.msrb.mxu3 %v2291_v44  ;;  %1026 = vmatpush.msrb.mxu1 %v2294_v46 }
 0x252   :  { %1007 = vmatpush.msrb.mxu0 %v2297_v49 }
 0x253   :  { %932 = vmatpush.msrb.mxu3 %v2300_v50  ;;  %1027 = vmatpush.msrb.mxu1 %v2303_v57 }
 0x254   :  { %1008 = vmatpush.msrb.mxu0 %v2306_v39 }
 0x255   :  { %933 = vmatpush.msrb.mxu3 %v2309_v47  ;;  %1028 = vmatpush.msrb.mxu1 %v1871_v51  ;;  %v2327_v51 = vld [vmem:[#allocation4 + $0x78] sm:$0xff] }
 0x256   :  { %1009 = vmatpush.msrb.mxu0 %v2313_v62 }
 0x257   :  { %934 = vmatpush.msrb.mxu3 %v2316_v38  ;;  %1029 = vmatpush.msrb.mxu1 %v1878_v52  ;;  %v2334_v52 = vld [vmem:[#allocation4 + $0x60] sm:$0xff] }
 0x258   :  { %1010 = vmatpush.msrb.mxu0 %v2320_v58 }
 0x259   :  { %935 = vmatpush.msrb.mxu3 %v2323_v14  ;;  %1030 = vmatpush.msrb.mxu1 %v1887_v54  ;;  %v2341_v54 = vld [vmem:[#allocation4 + $0x48] sm:$0xff] }
 0x25a   :  { %1011 = vmatpush.msrb.mxu0 %v2327_v51 }
 0x25b   :  { %936 = vmatpush.msrb.mxu3 %v2330_v8  ;;  %1031 = vmatpush.msrb.mxu1 %v1894_v55  ;;  %v2348_v55 = vld [vmem:[#allocation4 + $0x30] sm:$0xff] }
 0x25c   :  { %1012 = vmatpush.msrb.mxu0 %v2334_v52 }
 0x25d   :  { %937 = vmatpush.msrb.mxu3 %v2337_v45  ;;  %1032 = vmatpush.msrb.mxu1 %v1900_v56  ;;  %v2355_v56 = vld [vmem:[#allocation4 + $0x18] sm:$0xff] }
 0x25e   :  { %1013 = vmatpush.msrb.mxu0 %v2341_v54 }
 0x25f   :  { %938 = vmatpush.msrb.mxu3 %v2344_v63  ;;  %1033 = vmatpush.msrb.mxu1 %v2589_v3  ;;  %v2362_v3 = vld [vmem:[#allocation4] sm:$0xff] }
 0x260   :  { %1014 = vmatpush.msrb.mxu0 %v2348_v55 }
 0x261   :  { %939 = vmatpush.msrb.mxu3 %v2351_v17  ;;  %1034 = vmatpush.msrb.mxu1 %v2592_v7  ;;  %v1291_v7 = vperm.slane %v2598_v15, 2 }
 0x262   :  { %1015 = vmatpush.msrb.mxu0 %v2355_v56 }
 0x263   :  { %940 = vmatpush.msrb.mxu3 %v2358_v29  ;;  %1035 = vmatpush.msrb.mxu1 %v2595_v11 }
 0x264   :  { %1016 = vmatpush.msrb.mxu0 %v2362_v3 }
 0x265   :  { %1036 = vmatpush.msrb.mxu1 %v2597_v13 }
 0x283   :  { %v2366_v31 = vpop.permute.xlu1 %1325 }
 0x284   :  { %2603 = vst [vmem:[#allocation21_spill] sm:$0xff] %v2366_v31 }
 0x2b9   :  { %v1273_v26 = vpop.xlane.xlu1 %1272 }
 0x2ba   :  { %v1307_v36 = vadd.f32 %v1291_v7, %v1273_v26 }
 0x2bc   :  { %1328 = vperm.xlu2 %1448, %v1307_v36  }
 0x2c1   :  { %v690_v61 = vpop.f32.mrf.mxu0 }
 0x2c2   :  { %v733_v53 = vadd.f32 %v690_v61, %v221_v28 }
 0x2c4   :  { %v1430_v60 = vmul.f32 -1.442695, %v733_v53 }
 0x2c6   :  { %1481 = vpow2.f32 %v1430_v60 }
 0x2c7   :  { %v670_v11 = vpop.f32.mrf.mxu3 }
 0x2c8   :  { %v713_v0 = vadd.f32 %v670_v11, %v2605_v59  ;;  %v710_v11 = vpop.f32.mrf.mxu1 }
 0x2ca   :  { %v1429_v1 = vmul.f32 -1.442695, %v713_v0 }
 0x2cc   :  { %v1482_v4 = vpop.eup %1481  ;;  %1483 = vpow2.f32 %v1429_v1  ;;  %v753_v1 = vadd.f32 %v2074_v33, %v710_v11 }
 0x2cd   :  { %v737_v13 = vadd.f32 1.0, %v1482_v4 }
 0x2cf   :  { %1485 = vrcp.f32 %v737_v13  ;;  %v749_v20 = vand.u32 2147483648, %v737_v13  ;;  %vm743_vm15 = vweird.f32 %v737_v13  ;;  %v747_v15 = vand.u32 2147483647, %v737_v13 }
 0x2d1   :  { %vm748_vm1 = vcmp.eq.f32.partialorder %v747_v15, 8.507059e+37  ;;  %v1570_v15 = vld [vmem:[#allocation4 + $0xc8] sm:$0xff] }
 0x2d2   :  { %v1484_v5 = vpop.eup %1483 }
 0x2d3   :  { %v717_v9 = vadd.f32 1.0, %v1484_v5 }
 0x2d5   :  { %1487 = vrcp.f32 %v717_v9  ;;  %v1486_v10 = vpop.eup %1485  ;;  %v729_v28 = vand.u32 2147483648, %v717_v9  ;;  %v727_v53 = vand.u32 2147483647, %v717_v9  ;;  %vm723_vm11 = vweird.f32 %v717_v9 }
 0x2d6   :  { %v739_v16 = vmul.f32 %v1486_v10, %v737_v13  ;;  %vm744_vm14 = vweird.f32 %v1486_v10 }
 0x2d7   :  { %v730_v0 = vor.u32 1.1754944e-38, %v729_v28  ;;  %vm728_vm13 = vcmp.eq.f32.partialorder %v727_v53, 8.507059e+37  ;;  %vm745_vm0 = vmor %vm743_vm15, %vm744_vm14 }
 0x2d8   :  { %v740_v36 = vsub.f32 1.0, %v739_v16  ;;  %v2606_v16 = vld [vmem:[#allocation32_spill] sm:$0xff] }
 0x2da   :  { %v741_v60 = vmul.f32 %v1486_v10, %v740_v36 }
 0x2db   :  { %v1488_v7 = vpop.eup %1487 }
 0x2dc   :  { %v719_v26 = vmul.f32 %v1488_v7, %v717_v9  ;;  %vm724_vm10 = vweird.f32 %v1488_v7  ;;  %v742_v5 = vadd.f32 %v1486_v10, %v741_v60  ;;  %v750_v9 = vor.u32 1.1754944e-38, %v749_v20  ;;  %v1571_v20 = vld [vmem:[#allocation4 + $0xb0] sm:$0xff] }
 0x2dd   :  { %vm725_vm12 = vmor %vm723_vm11, %vm724_vm10 }
 0x2de   :  { %v720_v24 = vsub.f32 1.0, %v719_v26  ;;  %v262_v26 = vadd.f32 %v2606_v16, %v2077_v6 }
 0x2e0   :  { %v721_v61 = vmul.f32 %v1488_v7, %v720_v24 }
 0x2e2   :  { %v722_v59 = vadd.f32 %v1488_v7, %v721_v61  ;;  %v746_v61 = vsel %vm745_vm0, %v1486_v10, %v742_v5 }
 0x2e3   :  { %v751_v28 = vsel %vm748_vm1, %v750_v9, %v746_v61 }
 0x2e4   :  { %v726_v4 = vsel %vm725_vm12, %v1488_v7, %v722_v59  ;;  %v1239_v7 = vrot.slane %v2083_v2, 3  ;;  %v757_v53 = vsub.f32 1.0, %v751_v28  ;;  %v759_v59 = vmul.f32 %v751_v28, %v2234_v12  ;;  %v1572_v12 = vld [vmem:[#allocation4 + $0x98] sm:$0xff] }
 0x2e5   :  { %v731_v31 = vsel %vm728_vm13, %v730_v0, %v726_v4 }
 0x2e6   :  { %v754_v24 = vmul.f32 %v753_v1, %v731_v31  ;;  %v1247_v0 = vperm.slane %v1239_v7, 0 }
 0x2e8   :  { %v755_v36 = vadd.f32 %v754_v24, %v262_v26 }
 0x2ea   :  { %1489 = vtanh.f32 %v755_v36 }
 0x2f0   :  { %v1490_v60 = vpop.eup %1489 }
 0x2f1   :  { %v758_v11 = vmul.f32 %v1490_v60, %v757_v53 }
 0x2f3   :  { %v2377_v4 = vadd.f32 %v759_v59, %v758_v11 }
 0x2f5   :  { %785 = vmatmul.f32.vlgmr.msrb.gmra.mxu2 %v2377_v4  ;;  %805 = vmatmul.f32.vlgmr.msra.gmra.mxu3 %v2377_v4  ;;  %v1263_v31 = vmul.f32 %v1247_v0, %v2377_v4 }
 0x2f6   :  { %825 = vmatmul.f32.vlgmr.msra.gmra.mxu0 %v2377_v4  ;;  %1041 = vmatpush.msrb.mxu2 %v2240_v18 }
 0x2f7   :  { %1274 = vadd.xlane.f32.xlu2 %v1263_v31  ;;  %1117 = vmatpush.msra.mxu3 %v2243_v19  ;;  %v1573_v19 = vld [vmem:[#allocation4 + $0x80] sm:$0xff] }
 0x2f8   :  { %1042 = vmatpush.msrb.mxu2 %v2246_v48  ;;  %1137 = vmatpush.msra.mxu0 %v2249_v21  ;;  %v1574_v21 = vld [vmem:[#allocation4 + $0x68] sm:$0xff] }
 0x2f9   :  { %1118 = vmatpush.msra.mxu3 %v2252_v22  ;;  %v1575_v22 = vld [vmem:[#allocation4 + $0x50] sm:$0xff] }
 0x2fa   :  { %1043 = vmatpush.msrb.mxu2 %v2255_v23  ;;  %1138 = vmatpush.msra.mxu0 %v2258_v25  ;;  %v1576_v25 = vld [vmem:[#allocation4 + $0x38] sm:$0xff] }
 0x2fb   :  { %1119 = vmatpush.msra.mxu3 %v2261_v27  ;;  %v1577_v27 = vld [vmem:[#allocation4 + $0x20] sm:$0xff] }
 0x2fc   :  { %1044 = vmatpush.msrb.mxu2 %v2264_v30  ;;  %1139 = vmatpush.msra.mxu0 %v2267_v32  ;;  %v1578_v32 = vld [vmem:[#allocation4 + $0x8] sm:$0xff] }
 0x2fd   :  { %1120 = vmatpush.msra.mxu3 %v2270_v34  ;;  %v2422_v34 = vpop.permute.xlu2 %1322 }
 0x2fe   :  { %1045 = vmatpush.msrb.mxu2 %v2273_v35  ;;  %1140 = vmatpush.msra.mxu0 %v2276_v37 }
 0x2ff   :  { %1121 = vmatpush.msra.mxu3 %v2279_v40  ;;  %v2607_v40 = vld [vmem:[#allocation38_spill] sm:$0xff] }
 0x300   :  { %1046 = vmatpush.msrb.mxu2 %v2282_v41  ;;  %1141 = vmatpush.msra.mxu0 %v2285_v42  ;;  %v1292_v42 = vperm.slane %v2607_v40, 3 }
 0x301   :  { %1122 = vmatpush.msra.mxu3 %v2288_v43 }
 0x302   :  { %1047 = vmatpush.msrb.mxu2 %v2291_v44  ;;  %1142 = vmatpush.msra.mxu0 %v2294_v46 }
 0x303   :  { %1123 = vmatpush.msra.mxu3 %v2297_v49  ;;  %v2608_v49 = vld [vmem:[#allocation28_spill] sm:$0xff] }
 0x304   :  { %1048 = vmatpush.msrb.mxu2 %v2300_v50  ;;  %1143 = vmatpush.msra.mxu0 %v2303_v57  ;;  %v2609_v57 = vld [vmem:[#allocation35_spill] sm:$0xff] }
 0x305   :  { %1124 = vmatpush.msra.mxu3 %v2306_v39  ;;  %v224_v39 = vadd.f32 %v2609_v57, %v2608_v49 }
 0x306   :  { %1049 = vmatpush.msrb.mxu2 %v2309_v47  ;;  %1144 = vmatpush.msra.mxu0 %v1570_v15 }
 0x307   :  { %1125 = vmatpush.msra.mxu3 %v2313_v62 }
 0x308   :  { %1050 = vmatpush.msrb.mxu2 %v2316_v38  ;;  %1145 = vmatpush.msra.mxu0 %v1571_v20 }
 0x309   :  { %1126 = vmatpush.msra.mxu3 %v2320_v58 }
 0x30a   :  { %1051 = vmatpush.msrb.mxu2 %v2323_v14  ;;  %1146 = vmatpush.msra.mxu0 %v1572_v12  ;;  %v2611_v12 = vld [vmem:[#allocation34_spill] sm:$0xff] }
 0x30b   :  { %1127 = vmatpush.msra.mxu3 %v2327_v51  ;;  %v2610_v51 = vld [vmem:[#allocation25_spill] sm:$0xff] }
 0x30c   :  { %1052 = vmatpush.msrb.mxu2 %v2330_v8  ;;  %1147 = vmatpush.msra.mxu0 %v1573_v19  ;;  %v265_v19 = vadd.f32 %v2611_v12, %v2077_v6 }
 0x30d   :  { %1128 = vmatpush.msra.mxu3 %v2334_v52 }
 0x30e   :  { %1053 = vmatpush.msrb.mxu2 %v2337_v45  ;;  %1148 = vmatpush.msra.mxu0 %v1574_v21 }
 0x30f   :  { %1129 = vmatpush.msra.mxu3 %v2341_v54 }
 0x310   :  { %1054 = vmatpush.msrb.mxu2 %v2344_v63  ;;  %1149 = vmatpush.msra.mxu0 %v1575_v22 }
 0x311   :  { %1130 = vmatpush.msra.mxu3 %v2348_v55 }
 0x312   :  { %1055 = vmatpush.msrb.mxu2 %v2351_v17  ;;  %1150 = vmatpush.msra.mxu0 %v1576_v25 }
 0x313   :  { %1131 = vmatpush.msra.mxu3 %v2355_v56 }
 0x314   :  { %1056 = vmatpush.msrb.mxu2 %v2358_v29  ;;  %1151 = vmatpush.msra.mxu0 %v1577_v27 }
 0x315   :  { %1132 = vmatpush.msra.mxu3 %v2362_v3 }
 0x316   :  { %1152 = vmatpush.msra.mxu0 %v1578_v32  ;;  %v2424_v37 = vpop.permute.xlu2 %1328 }
 0x36a   :  { %v1275_v43 = vpop.xlane.xlu2 %1274 }
 0x36b   :  { %v1308_v46 = vadd.f32 %v1292_v42, %v1275_v43 }
 0x36d   :  { %1331 = vperm.xlu0 %1447, %v1308_v46  }
 0x373   :  { %v826_v53 = vpop.f32.mrf.mxu0 }
 0x374   :  { %v869_v0 = vadd.f32 %v2074_v33, %v826_v53  ;;  %v1240_v33 = vrot.slane %v2083_v2, 4 }
 0x378   :  { %v786_v62 = vpop.f32.mrf.mxu2  ;;  %v806_v58 = vpop.f32.mrf.mxu3 }
 0x379   :  { %v829_v52 = vadd.f32 %v786_v62, %v2610_v51  ;;  %v849_v54 = vadd.f32 %v806_v58, %v224_v39  ;;  %v1248_v58 = vperm.slane %v1240_v33, 0 }
 0x37b   :  { %v1431_v55 = vmul.f32 -1.442695, %v829_v52  ;;  %v1432_v56 = vmul.f32 -1.442695, %v849_v54 }
 0x37d   :  { %1491 = vpow2.f32 %v1431_v55 }
 0x37e   :  { %1493 = vpow2.f32 %v1432_v56 }
 0x383   :  { %v1492_v3 = vpop.eup %1491 }
 0x384   :  { %v1494_v13 = vpop.eup %1493  ;;  %v833_v10 = vadd.f32 1.0, %v1492_v3 }
 0x385   :  { %v853_v1 = vadd.f32 1.0, %v1494_v13 }
 0x386   :  { %1495 = vrcp.f32 %v833_v10  ;;  %v845_v61 = vand.u32 2147483648, %v833_v10  ;;  %v843_v7 = vand.u32 2147483647, %v833_v10  ;;  %vm839_vm3 = vweird.f32 %v833_v10 }
 0x387   :  { %1497 = vrcp.f32 %v853_v1  ;;  %v865_v22 = vand.u32 2147483648, %v853_v1  ;;  %vm859_vm7 = vweird.f32 %v853_v1  ;;  %v863_v25 = vand.u32 2147483647, %v853_v1 }
 0x388   :  { %v846_v59 = vor.u32 1.1754944e-38, %v845_v61  ;;  %vm844_vm5 = vcmp.eq.f32.partialorder %v843_v7, 8.507059e+37 }
 0x389   :  { %v866_v42 = vor.u32 1.1754944e-38, %v865_v22  ;;  %vm864_vm9 = vcmp.eq.f32.partialorder %v863_v25, 8.507059e+37 }
 0x38c   :  { %v1496_v5 = vpop.eup %1495 }
 0x38d   :  { %v1498_v16 = vpop.eup %1497  ;;  %v835_v26 = vmul.f32 %v1496_v5, %v833_v10  ;;  %vm840_vm2 = vweird.f32 %v1496_v5 }
 0x38e   :  { %v855_v24 = vmul.f32 %v1498_v16, %v853_v1  ;;  %vm841_vm4 = vmor %vm839_vm3, %vm840_vm2  ;;  %vm860_vm6 = vweird.f32 %v1498_v16 }
 0x38f   :  { %v836_v36 = vsub.f32 1.0, %v835_v26  ;;  %vm861_vm8 = vmor %vm859_vm7, %vm860_vm6 }
 0x390   :  { %v856_v9 = vsub.f32 1.0, %v855_v24  ;;  %v2614_v24 = vld [vmem:[#allocation36_spill] sm:$0xff] }
 0x391   :  { %v837_v28 = vmul.f32 %v1496_v5, %v836_v36  ;;  %v268_v36 = vadd.f32 %v2614_v24, %v2077_v6 }
 0x392   :  { %v857_v60 = vmul.f32 %v1498_v16, %v856_v9 }
 0x393   :  { %v838_v11 = vadd.f32 %v1496_v5, %v837_v28 }
 0x394   :  { %v858_v20 = vadd.f32 %v1498_v16, %v857_v60 }
 0x395   :  { %v842_v31 = vsel %vm841_vm4, %v1496_v5, %v838_v11 }
 0x396   :  { %v847_v15 = vsel %vm844_vm5, %v846_v59, %v842_v31  ;;  %v862_v32 = vsel %vm861_vm8, %v1498_v16, %v858_v20  ;;  %v2463_v16 = vld [vmem:[%s2517_s4] ss:$0 sm:$0xff] }
 0x397   :  { %v870_v21 = vmul.f32 %v869_v0, %v847_v15  ;;  %v867_v43 = vsel %vm864_vm9, %v866_v42, %v862_v32  ;;  %v2471_v15 = vld [vmem:[%s2518_s5] sm:$0xff]  ;;  %v1294_v42 = vperm.slane %v2607_v40, 5  ;;  %s1638_s5 = smov [#allocation7]  }
 0x398   :  { %v873_v46 = vsub.f32 1.0, %v867_v43  ;;  %v875_v62 = vmul.f32 %v867_v43, %v2377_v4  ;;  %v1241_v20 = vrot.slane %v2471_v15, 5  ;;  %s1377_s10 = sshll.u32 %s1638_s5, 4  ;;  %s1378_s10 = int_to_ptr.vmem [resolvable:$true] %s1377_s10 }
 0x399   :  { %v871_v27 = vadd.f32 %v870_v21, %v265_v19 }
 0x39a   :  { %v1249_v25 = vperm.slane %v1241_v20, 0 }
 0x39b   :  { %1499 = vtanh.f32 %v871_v27 }
 0x3a1   :  { %v1500_v57 = vpop.eup %1499 }
 0x3a2   :  { %v874_v39 = vmul.f32 %v1500_v57, %v873_v46  ;;  %v2615_v46 = vld [vmem:[#allocation40_spill] sm:$0xff] }
 0x3a3   :  { %v230_v57 = vadd.f32 %v2615_v46, %v2608_v49 }
 0x3a4   :  { %v2435_v51 = vadd.f32 %v875_v62, %v874_v39 }
 0x3a6   :  { %901 = vmatmul.f32.vlgmr.msra.gmra.mxu1 %v2435_v51  ;;  %921 = vmatmul.f32.vlgmr.msra.gmra.mxu2 %v2435_v51  ;;  %v1264_v52 = vmul.f32 %v1248_v58, %v2435_v51  ;;  %v2616_v58 = vld [vmem:[#allocation27_spill] sm:$0xff] }
 0x3a7   :  { %941 = vmatmul.f32.vlgmr.msrb.gmra.mxu3 %v2435_v51  ;;  %1157 = vmatpush.msra.mxu1 %v2240_v18  ;;  %v2612_v18 = vld [vmem:[#allocation26_spill] sm:$0xff] }
 0x3a8   :  { %1276 = vadd.xlane.f32.xlu2 %v1264_v52 }
 0x3a9   :  { %1158 = vmatpush.msra.mxu1 %v2246_v48 }
 0x3ab   :  { %1159 = vmatpush.msra.mxu1 %v2255_v23 }
 0x3ad   :  { %1160 = vmatpush.msra.mxu1 %v2264_v30  ;;  %v2613_v30 = vld [vmem:[#allocation37_spill] sm:$0xff] }
 0x3af   :  { %1161 = vmatpush.msra.mxu1 %v2273_v35  ;;  %v227_v35 = vadd.f32 %v2613_v30, %v2608_v49 }
 0x3b1   :  { %1162 = vmatpush.msra.mxu1 %v2282_v41 }
 0x3b3   :  { %1163 = vmatpush.msra.mxu1 %v2291_v44 }
 0x3b5   :  { %1164 = vmatpush.msra.mxu1 %v2300_v50 }
 0x3b7   :  { %1165 = vmatpush.msra.mxu1 %v2309_v47 }
 0x3b9   :  { %1166 = vmatpush.msra.mxu1 %v2316_v38 }
 0x3bb   :  { %1167 = vmatpush.msra.mxu1 %v2323_v14 }
 0x3bd   :  { %1168 = vmatpush.msra.mxu1 %v2330_v8 }
 0x3bf   :  { %1169 = vmatpush.msra.mxu1 %v2337_v45 }
 0x3c1   :  { %1170 = vmatpush.msra.mxu1 %v2344_v63 }
 0x3c3   :  { %1171 = vmatpush.msra.mxu1 %v2351_v17 }
 0x3c5   :  { %1172 = vmatpush.msra.mxu1 %v2358_v29 }
 0x423   :  { %v902_v2 = vpop.f32.mrf.mxu1 }
 0x424   :  { %v945_v48 = vadd.f32 %v902_v2, %v2612_v18 }
 0x426   :  { %v1433_v23 = vmul.f32 -1.442695, %v945_v48 }
 0x428   :  { %1501 = vpow2.f32 %v1433_v23 }
 0x429   :  { %v922_v41 = vpop.f32.mrf.mxu2 }
 0x42a   :  { %v965_v44 = vadd.f32 %v922_v41, %v227_v35  ;;  %v942_v56 = vpop.f32.mrf.mxu3 }
 0x42b   :  { %v985_v26 = vadd.f32 %v2463_v16, %v942_v56 }
 0x42c   :  { %v1434_v50 = vmul.f32 -1.442695, %v965_v44 }
 0x42e   :  { %v1502_v47 = vpop.eup %1501  ;;  %1503 = vpow2.f32 %v1434_v50 }
 0x42f   :  { %v949_v38 = vadd.f32 1.0, %v1502_v47 }
 0x431   :  { %1505 = vrcp.f32 %v949_v38  ;;  %v961_v29 = vand.u32 2147483648, %v949_v38  ;;  %v959_v54 = vand.u32 2147483647, %v949_v38  ;;  %vm955_vm11 = vweird.f32 %v949_v38 }
 0x433   :  { %v962_v10 = vor.u32 1.1754944e-38, %v961_v29  ;;  %vm960_vm13 = vcmp.eq.f32.partialorder %v959_v54, 8.507059e+37 }
 0x434   :  { %v1504_v14 = vpop.eup %1503 }
 0x435   :  { %v969_v8 = vadd.f32 1.0, %v1504_v14 }
 0x437   :  { %v1506_v45 = vpop.eup %1505  ;;  %1507 = vrcp.f32 %v969_v8  ;;  %v981_v28 = vand.u32 2147483648, %v969_v8  ;;  %v979_v53 = vand.u32 2147483647, %v969_v8  ;;  %vm975_vm15 = vweird.f32 %v969_v8 }
 0x438   :  { %v951_v63 = vmul.f32 %v1506_v45, %v949_v38  ;;  %vm956_vm10 = vweird.f32 %v1506_v45 }
 0x439   :  { %vm957_vm12 = vmor %vm955_vm11, %vm956_vm10  ;;  %v982_v59 = vor.u32 1.1754944e-38, %v981_v28  ;;  %vm980_vm1 = vcmp.eq.f32.partialorder %v979_v53, 8.507059e+37 }
 0x43a   :  { %v952_v17 = vsub.f32 1.0, %v951_v63 }
 0x43c   :  { %v953_v4 = vmul.f32 %v1506_v45, %v952_v17 }
 0x43d   :  { %v1508_v55 = vpop.eup %1507 }
 0x43e   :  { %v971_v3 = vmul.f32 %v1508_v55, %v969_v8  ;;  %v954_v13 = vadd.f32 %v1506_v45, %v953_v4  ;;  %vm976_vm14 = vweird.f32 %v1508_v55 }
 0x43f   :  { %vm977_vm0 = vmor %vm975_vm15, %vm976_vm14 }
 0x440   :  { %v972_v1 = vsub.f32 1.0, %v971_v3  ;;  %v958_v5 = vsel %vm957_vm12, %v1506_v45, %v954_v13 }
 0x441   :  { %v963_v61 = vsel %vm960_vm13, %v962_v10, %v958_v5  ;;  %v2617_v10 = vld [vmem:[#allocation39_spill] sm:$0xff] }
 0x442   :  { %v973_v9 = vmul.f32 %v1508_v55, %v972_v1  ;;  %v986_v7 = vmul.f32 %v985_v26, %v963_v61  ;;  %v271_v1 = vadd.f32 %v2617_v10, %v2077_v6 }
 0x444   :  { %v974_v60 = vadd.f32 %v1508_v55, %v973_v9  ;;  %v987_v11 = vadd.f32 %v986_v7, %v268_v36  ;;  %v1242_v7 = vrot.slane %v2471_v15, 6 }
 0x446   :  { %v978_v0 = vsel %vm977_vm0, %v1508_v55, %v974_v60  ;;  %1509 = vtanh.f32 %v987_v11 }
 0x447   :  { %v983_v31 = vsel %vm980_vm1, %v982_v59, %v978_v0  ;;  %v1250_v0 = vperm.slane %v1242_v7, 0 }
 0x448   :  { %v989_v12 = vsub.f32 1.0, %v983_v31  ;;  %v991_v22 = vmul.f32 %v983_v31, %v2435_v51 }
 0x44c   :  { %v1510_v19 = vpop.eup %1509 }
 0x44d   :  { %v990_v21 = vmul.f32 %v1510_v19, %v989_v12  ;;  %v1293_v12 = vperm.slane %v2607_v40, 4  ;;  %v1277_v19 = vpop.xlane.xlu2 %1276 }
 0x44f   :  { %v2475_v27 = vadd.f32 %v991_v22, %v990_v21  ;;  %v1309_v21 = vadd.f32 %v1293_v12, %v1277_v19  ;;  %v1295_v22 = vperm.slane %v2607_v40, 6  ;;  %v1332_v19 = vpop.permute.xlu0 %1331 }
 0x451   :  { %1017 = vmatmul.f32.vlgmr.msrb.gmra.mxu0 %v2475_v27  ;;  %1037 = vmatmul.f32.vlgmr.msrb.gmra.mxu1 %v2475_v27  ;;  %v1265_v32 = vmul.f32 %v1249_v25, %v2475_v27 }
 0x452   :  { %1057 = vmatmul.f32.vlgmr.msrb.gmra.mxu2 %v2475_v27 }
 0x453   :  { %1278 = vadd.xlane.f32.xlu1 %v1265_v32  ;;  %v2618_v32 = vld [vmem:[#allocation29_spill] sm:$0xff] }
 0x4c6   :  { %v1279_v43 = vpop.xlane.xlu1 %1278 }
 0x4c7   :  { %v1310_v33 = vadd.f32 %v1294_v42, %v1279_v43  ;;  %v233_v42 = vadd.f32 %v2618_v32, %v2608_v49 }
 0x4c9   :  { %1337 = vperm.xlu1 %1449, %v1310_v33  }
 0x4ce   :  { %v1018_v39 = vpop.f32.mrf.mxu0  ;;  %v1038_v62 = vpop.f32.mrf.mxu1 }
 0x4cf   :  { %v1061_v51 = vadd.f32 %v1018_v39, %v2616_v58  ;;  %v1081_v52 = vadd.f32 %v1038_v62, %v230_v57  ;;  %v2619_v39 = vld [vmem:[#allocation22_spill] sm:$0xff] }
 0x4d1   :  { %v1435_v2 = vmul.f32 -1.442695, %v1061_v51  ;;  %v1436_v18 = vmul.f32 -1.442695, %v1081_v52 }
 0x4d3   :  { %1511 = vpow2.f32 %v1435_v2 }
 0x4d4   :  { %1513 = vpow2.f32 %v1436_v18 }
 0x4d5   :  { %v1058_v29 = vpop.f32.mrf.mxu2 }
 0x4d6   :  { %v1101_v56 = vadd.f32 %v2463_v16, %v1058_v29 }
 0x4d9   :  { %v1512_v48 = vpop.eup %1511 }
 0x4da   :  { %v1514_v23 = vpop.eup %1513  ;;  %v1065_v30 = vadd.f32 1.0, %v1512_v48 }
 0x4db   :  { %v1085_v35 = vadd.f32 1.0, %v1514_v23 }
 0x4dc   :  { %1515 = vrcp.f32 %v1065_v30  ;;  %v1077_v8 = vand.u32 2147483648, %v1065_v30  ;;  %v1075_v63 = vand.u32 2147483647, %v1065_v30  ;;  %vm1071_vm3 = vweird.f32 %v1065_v30 }
 0x4dd   :  { %1517 = vrcp.f32 %v1085_v35  ;;  %v1097_v5 = vand.u32 2147483648, %v1085_v35  ;;  %vm1091_vm7 = vweird.f32 %v1085_v35  ;;  %v1095_v24 = vand.u32 2147483647, %v1085_v35 }
 0x4de   :  { %v1078_v54 = vor.u32 1.1754944e-38, %v1077_v8  ;;  %vm1076_vm5 = vcmp.eq.f32.partialorder %v1075_v63, 8.507059e+37 }
 0x4df   :  { %v1098_v9 = vor.u32 1.1754944e-38, %v1097_v5  ;;  %vm1096_vm9 = vcmp.eq.f32.partialorder %v1095_v24, 8.507059e+37 }
 0x4e2   :  { %v1516_v41 = vpop.eup %1515 }
 0x4e3   :  { %v1518_v44 = vpop.eup %1517  ;;  %v1067_v50 = vmul.f32 %v1516_v41, %v1065_v30  ;;  %vm1072_vm2 = vweird.f32 %v1516_v41 }
 0x4e4   :  { %v1087_v47 = vmul.f32 %v1518_v44, %v1085_v35  ;;  %vm1073_vm4 = vmor %vm1071_vm3, %vm1072_vm2  ;;  %vm1092_vm6 = vweird.f32 %v1518_v44  ;;  %vm1355_vm2 = vcmask 1041409   ;;  %vm1357_vm3 = vcmask 1042434  }
 0x4e5   :  { %v1068_v38 = vsub.f32 1.0, %v1067_v50  ;;  %vm1093_vm8 = vmor %vm1091_vm7, %vm1092_vm6  ;;  %vm1363_vm6 = vcmask 1045509   ;;  %vm1365_vm7 = vcmask 1046534  }
 0x4e6   :  { %v1088_v14 = vsub.f32 1.0, %v1087_v47 }
 0x4e7   :  { %v1069_v45 = vmul.f32 %v1516_v41, %v1068_v38 }
 0x4e8   :  { %v1089_v17 = vmul.f32 %v1518_v44, %v1088_v14 }
 0x4e9   :  { %v1070_v4 = vadd.f32 %v1516_v41, %v1069_v45 }
 0x4ea   :  { %v1090_v3 = vadd.f32 %v1518_v44, %v1089_v17 }
 0x4eb   :  { %v1074_v55 = vsel %vm1073_vm4, %v1516_v41, %v1070_v4  ;;  %vm1359_vm4 = vcmask 1043459  }
 0x4ec   :  { %v1079_v13 = vsel %vm1076_vm5, %v1078_v54, %v1074_v55  ;;  %v1094_v61 = vsel %vm1093_vm8, %v1518_v44, %v1090_v3  ;;  %v2620_v54 = vld [vmem:[#allocation41_spill] sm:$0xff]  ;;  %vm1361_vm5 = vcmask 1044484   ;;  %vm1367_vm8 = vcmask 1047559  }
 0x4ed   :  { %v1102_v26 = vmul.f32 %v1101_v56, %v1079_v13  ;;  %v1099_v28 = vsel %vm1096_vm9, %v1098_v9, %v1094_v61  ;;  %v274_v55 = vadd.f32 %v2620_v54, %v2077_v6  ;;  %vm1370_vm9 = vcmask 64512  }
 0x4ee   :  { %v1105_v53 = vsub.f32 1.0, %v1099_v28  ;;  %v1107_v59 = vmul.f32 %v1099_v28, %v2475_v27 }
 0x4ef   :  { %v1103_v36 = vadd.f32 %v1102_v26, %v271_v1 }
 0x4f1   :  { %1519 = vtanh.f32 %v1103_v36 }
 0x4f7   :  { %v1520_v60 = vpop.eup %1519 }
 0x4f8   :  { %v1106_v11 = vmul.f32 %v1520_v60, %v1105_v53  ;;  %v1296_v60 = vperm.slane %v2607_v40, 7 }
 0x4fa   :  { %v2490_v31 = vadd.f32 %v1107_v59, %v1106_v11 }
 0x4fc   :  { %1133 = vmatmul.f32.vlgmr.msra.gmra.mxu3 %v2490_v31  ;;  %1153 = vmatmul.f32.vlgmr.msra.gmra.mxu0 %v2490_v31  ;;  %v1266_v20 = vmul.f32 %v1250_v0, %v2490_v31  ;;  %v1345_v0 = vlaneseq }
 0x4fd   :  { %1173 = vmatmul.f32.vlgmr.msra.gmra.mxu1 %v2490_v31 }
 0x4fe   :  { %1280 = vadd.xlane.f32.xlu2 %v1266_v20  ;;  %v1346_v12 = vand.u32 127, %v1345_v0 }
 0x516   :  { %1334 = vperm.xlu2 %1448, %v1309_v21  }
 0x53b   :  { %v1338_v53 = vpop.permute.xlu1 %1337 }
 0x571   :  { %v1281_v25 = vpop.xlane.xlu2 %1280 }
 0x572   :  { %v1311_v27 = vadd.f32 %v1295_v22, %v1281_v25  ;;  %v1349_v22 = vperm.slane %v2424_v37, %v1346_v12  ;;  %v1350_v25 = vperm.slane %v1332_v19, %v1346_v12 }
 0x574   :  { %1340 = vperm.xlu2 %1448, %v1311_v27  }
 0x579   :  { %v1154_v43 = vpop.f32.mrf.mxu0  ;;  %v1335_v20 = vpop.permute.xlu2 %1334 }
 0x57a   :  { %v1197_v33 = vadd.f32 %v1154_v43, %v233_v42  ;;  %v1174_v38 = vpop.f32.mrf.mxu1  ;;  %v1351_v27 = vperm.slane %v1335_v20, %v1346_v12 }
 0x57b   :  { %v1217_v63 = vadd.f32 %v2463_v16, %v1174_v38  ;;  %v1243_v16 = vrot.slane %v2471_v15, 7  ;;  %v2621_v15 = vld [vmem:[#allocation21_spill] sm:$0xff] }
 0x57c   :  { %v1438_v46 = vmul.f32 -1.442695, %v1197_v33  ;;  %v1348_v21 = vperm.slane %v2621_v15, %v1346_v12 }
 0x57d   :  { %v1251_v28 = vperm.slane %v1243_v16, 0 }
 0x57e   :  { %1521 = vpow2.f32 %v1438_v46 }
 0x57f   :  { %v1134_v57 = vpop.f32.mrf.mxu3 }
 0x580   :  { %v1177_v62 = vadd.f32 %v1134_v57, %v2619_v39  ;;  %v1352_v57 = vperm.slane %v1338_v53, %v1346_v12 }
 0x582   :  { %v1437_v58 = vmul.f32 -1.442695, %v1177_v62 }
 0x584   :  { %v1522_v51 = vpop.eup %1521  ;;  %1523 = vpow2.f32 %v1437_v58 }
 0x585   :  { %v1201_v52 = vadd.f32 1.0, %v1522_v51 }
 0x587   :  { %1525 = vrcp.f32 %v1201_v52  ;;  %v1213_v56 = vand.u32 2147483648, %v1201_v52  ;;  %vm1207_vm15 = vweird.f32 %v1201_v52  ;;  %v1211_v13 = vand.u32 2147483647, %v1201_v52 }
 0x589   :  { %v1214_v5 = vor.u32 1.1754944e-38, %v1213_v56  ;;  %vm1212_vm1 = vcmp.eq.f32.partialorder %v1211_v13, 8.507059e+37 }
 0x58a   :  { %v1524_v2 = vpop.eup %1523 }
 0x58b   :  { %v1181_v18 = vadd.f32 1.0, %v1524_v2 }
 0x58d   :  { %1527 = vrcp.f32 %v1181_v18  ;;  %v1526_v48 = vpop.eup %1525  ;;  %v1193_v44 = vand.u32 2147483648, %v1181_v18  ;;  %v1191_v47 = vand.u32 2147483647, %v1181_v18  ;;  %vm1187_vm11 = vweird.f32 %v1181_v18 }
 0x58e   :  { %v1203_v23 = vmul.f32 %v1526_v48, %v1201_v52  ;;  %vm1208_vm14 = vweird.f32 %v1526_v48 }
 0x58f   :  { %v1194_v45 = vor.u32 1.1754944e-38, %v1193_v44  ;;  %vm1192_vm13 = vcmp.eq.f32.partialorder %v1191_v47, 8.507059e+37  ;;  %vm1209_vm0 = vmor %vm1207_vm15, %vm1208_vm14 }
 0x590   :  { %v1204_v49 = vsub.f32 1.0, %v1203_v23 }
 0x592   :  { %v1205_v14 = vmul.f32 %v1526_v48, %v1204_v49 }
 0x593   :  { %v1528_v30 = vpop.eup %1527 }
 0x594   :  { %v1183_v35 = vmul.f32 %v1528_v30, %v1181_v18  ;;  %vm1188_vm10 = vweird.f32 %v1528_v30  ;;  %v1206_v4 = vadd.f32 %v1526_v48, %v1205_v14 }
 0x595   :  { %vm1189_vm12 = vmor %vm1187_vm11, %vm1188_vm10 }
 0x596   :  { %v1184_v41 = vsub.f32 1.0, %v1183_v35  ;;  %v1210_v1 = vsel %vm1209_vm0, %v1526_v48, %v1206_v4 }
 0x597   :  { %v1215_v26 = vsel %vm1212_vm1, %v1214_v5, %v1210_v1 }
 0x598   :  { %v1185_v50 = vmul.f32 %v1528_v30, %v1184_v41  ;;  %v1221_v24 = vsub.f32 1.0, %v1215_v26  ;;  %v1223_v9 = vmul.f32 %v1215_v26, %v2490_v31  ;;  %v1347_v31 = vperm.slane %v2422_v34, %v1346_v12 }
 0x59a   :  { %v1186_v8 = vadd.f32 %v1528_v30, %v1185_v50  ;;  %v1356_v32 = vsel %vm1355_vm2, %v1348_v21, %v1347_v31 }
 0x59b   :  { %v1358_v42 = vsel %vm1357_vm3, %v1349_v22, %v1356_v32 }
 0x59c   :  { %v1190_v17 = vsel %vm1189_vm12, %v1528_v30, %v1186_v8  ;;  %v1360_v43 = vsel %vm1359_vm4, %v1350_v25, %v1358_v42 }
 0x59d   :  { %v1195_v29 = vsel %vm1192_vm13, %v1194_v45, %v1190_v17  ;;  %v1362_v33 = vsel %vm1361_vm5, %v1351_v27, %v1360_v43 }
 0x59e   :  { %v1218_v3 = vmul.f32 %v1217_v63, %v1195_v29  ;;  %v1364_v37 = vsel %vm1363_vm6, %v1352_v57, %v1362_v33 }
 0x5a0   :  { %v1219_v10 = vadd.f32 %v1218_v3, %v274_v55 }
 0x5a2   :  { %1529 = vtanh.f32 %v1219_v10 }
 0x5a8   :  { %v1530_v36 = vpop.eup %1529 }
 0x5a9   :  { %v1222_v61 = vmul.f32 %v1530_v36, %v1221_v24 }
 0x5ab   :  { %v1224_v6 = vadd.f32 %v1223_v9, %v1222_v61 }
 0x5ad   :  { %v1267_v7 = vmul.f32 %v1251_v28, %v1224_v6 }
 0x5af   :  { %1282 = vadd.xlane.f32.xlu1 %v1267_v7 }
 0x5ce   :  { %v1341_v40 = vpop.permute.xlu2 %1340 }
 0x5cf   :  { %v1353_v46 = vperm.slane %v1341_v40, %v1346_v12 }
 0x5d1   :  { %v1366_v62 = vsel %vm1365_vm7, %v1353_v46, %v1364_v37 }
 0x622   :  { %v1283_v11 = vpop.xlane.xlu1 %1282 }
 0x623   :  { %v1312_v59 = vadd.f32 %v1296_v60, %v1283_v11 }
 0x625   :  { %1343 = vperm.xlu1 %1449, %v1312_v59  }
 0x697   :  { %v1344_v34 = vpop.permute.xlu1 %1343 }
 0x698   :  { %v1354_v39 = vperm.slane %v1344_v34, %v1346_v12 }
 0x69a   :  { %v1368_v58 = vsel %vm1367_vm8, %v1354_v39, %v1366_v62 }
 0x69b   :  { %1371 = vst.msk [vmem:[#allocation7] sm:$0xff] %vm1370_vm9, %v1368_v58 }
 0x69c   :  { %1382 = dma.vmem_to_hbm [thread:$0]  %s1378_s10, 128, %s1380_s13, [#allocation6]  }
 0x69d   :  { %1631 = dma.done.wait [#allocation6], 128  }
 0x69e   :  { %1632 = vsyncadd [#allocation6], 4294967168 }
 0x69f   :  { %1387 = vsyncpa [#allocation5], 1 }
 0x6a0   :  { %1388 = vsyncpa [#allocation6], 1 }

</bundles_post_ra>
